<compile_context>
chip_gen: v7x
topology: tpu7x:2x2x1
jax: 0.10.0
libtpu: 0.0.40
codegen_flags: <defaults>
</compile_context>

<pallas_src>
import functools
import math

import jax
import jax.numpy as jnp
from jax import lax
from jax.experimental import pallas as pl
from jax.experimental.pallas import tpu as pltpu

# ----------------------------- hyperparameters ------------------------------
IN_DIM = 6          # in_dim
HIDDEN_LAYER = 3    # total layers per conditioner MLP (as in build_base_net)
N_NODES = 32        # n_nodes
COND_DIM = 6        # cond_dim
K = 5               # number of spline bins
B_BOUND = 1.0       # tail bound B
BATCH = 8

_HI = lax.Precision.HIGHEST


def _softplus(x):
    return jnp.maximum(x, 0.0) + jnp.log(1.0 + jnp.exp(-jnp.abs(x)))


# --------------------------------- kernel -----------------------------------
def nsf_ar_kernel(x_ref, cond_ref, a1_ref, *rest,
                  in_dim, k_bins, n_mid, tail_bound):
    ahid_refs = rest[:n_mid]
    aout_ref = rest[n_mid]
    z_ref = rest[n_mid + 1]
    ld_ref = rest[n_mid + 2]

    f32 = jnp.float32
    x = x_ref[...]                       # (N, in_dim)
    cond = cond_ref[...]                 # (N, cond_dim)
    n = x.shape[0]
    D = in_dim
    Kb = k_bins
    KD = Kb * D
    one = jnp.ones((n, 1), f32)

    # ---- all (in_dim-1) conditioner MLPs: ONE fused matmul per layer --------
    # TODO(synk): casting operands to bf16 here (f32 accumulation) would cut MXU
    # passes ~3x, but leaves no headroom against the 5e-3 check vs an f32 reference.
    def dense(inp, w_ref):
        aug = jnp.concatenate([inp, cond, one], axis=1)          # [h | cond | 1]
        return jnp.dot(aug, w_ref[...], precision=_HI,
                       preferred_element_type=f32)

    h = jnp.tanh(dense(x, a1_ref))
    for l in range(n_mid):
        # TODO(synk): on v5e (128x128 MXU) split this block-diagonal (167,160) dot
        # into the diagonal 128x128 and 32x32 sub-blocks to skip all-zero tiles.
        h = jnp.tanh(dense(h, ahid_refs[l]))
    params = dense(h, aout_ref)
    # params: (N, in_dim*(3K-1)) with k-major lanes:
    #   [W logits: lane k*D+i | H logits: KD + k*D+i | D logits: 2KD + k*D+i]
    # column i=0 is init_param (folded into the packed bias row).

    Wlog = params[:, :KD]
    Hlog = params[:, KD:2 * KD]
    Dlog = params[:, 2 * KD:]

    def seg(a, k):                       # bin-k slice across all columns: (N, D)
        return a[:, k * D:(k + 1) * D]

    # ---- segmented softmax over bins, all columns at once --------------------
    mW = seg(Wlog, 0)
    mH = seg(Hlog, 0)
    for k in range(1, Kb):
        mW = jnp.maximum(mW, seg(Wlog, k))
        mH = jnp.maximum(mH, seg(Hlog, k))
    shiftW = jnp.concatenate([mW] * Kb, axis=1)
    shiftH = jnp.concatenate([mH] * Kb, axis=1)
    # one EUP exp covers both softmax numerators and the softplus term
    E = jnp.exp(jnp.concatenate(
        [Wlog - shiftW, Hlog - shiftH, -jnp.abs(Dlog)], axis=1))
    eW = E[:, :KD]
    eH = E[:, KD:2 * KD]
    eD = E[:, 2 * KD:]

    sW = seg(eW, 0)
    sH = seg(eH, 0)
    for k in range(1, Kb):
        sW = sW + seg(eW, k)
        sH = sH + seg(eH, k)
    inv = (2.0 * tail_bound) / jnp.concatenate([sW, sH], axis=1)   # exact divide
    invW = inv[:, :D]
    invH = inv[:, D:]
    Wn = [seg(eW, k) * invW for k in range(Kb)]      # per-bin widths, (N, D) each
    Hn = [seg(eH, k) * invH for k in range(Kb)]
    Dp = jnp.maximum(Dlog, 0.0) + jnp.log(1.0 + eD)  # softplus, (N, (K-1)*D)

    # ---- knots (unrolled cumsum), bin search, one-hot picks ------------------
    cumW = [Wn[0]]
    cumH = [Hn[0]]
    for k in range(1, Kb):
        cumW.append(cumW[-1] + Wn[k])
        cumH.append(cumH[-1] + Hn[k])
    knots_right = [c - tail_bound for c in cumW]
    knots_left = [knots_right[k] - Wn[k] for k in range(Kb)]
    knots_bottom = [cumH[k] - tail_bound - Hn[k] for k in range(Kb)]

    xk = jnp.clip(x, -tail_bound, tail_bound)
    cnt = (xk >= knots_right[0]).astype(f32)
    for k in range(1, Kb - 1):
        cnt = cnt + (xk >= knots_right[k]).astype(f32)
    onehot = [(cnt == float(k)).astype(f32) for k in range(Kb)]

    def pick(vals):
        acc = onehot[0] * vals[0]
        for k in range(1, Kb):
            acc = acc + onehot[k] * vals[k]
        return acc

    in_left = pick(knots_left)
    in_w = pick(Wn)
    in_bottom = pick(knots_bottom)
    in_h = pick(Hn)

    d_k = onehot[0]                       # boundary derivatives are 1
    d_k1 = onehot[Kb - 1]
    for k in range(Kb - 1):
        dpk = seg(Dp, k)                  # derivative at internal knot k+1
        d_k = d_k + onehot[k + 1] * dpk
        d_k1 = d_k1 + onehot[k] * dpk

    inv_w = 1.0 / in_w                    # exact: feeds theta, delta^2 and the log
    in_delta = in_h * inv_w
    theta = (xk - in_left) * inv_w
    t1mt = theta * (1.0 - theta)
    numerator = in_h * (in_delta * theta * theta + d_k * t1mt)
    denominator = in_delta + (d_k + d_k1 - 2.0 * in_delta) * t1mt
    inv_den = 1.0 / denominator
    y = in_bottom + numerator * inv_den
    dnum = in_delta * in_delta * (d_k1 * theta * theta + 2.0 * in_delta * t1mt
                                  + d_k * (1.0 - theta) * (1.0 - theta))
    logabsdet = jnp.log(dnum * inv_den * inv_den)    # fused: log(dnum) - 2*log(den)

    inside = jnp.logical_and(x >= -tail_bound, x <= tail_bound)
    z_ref[...] = jnp.where(inside, y, x)
    ld_ref[...] = jnp.where(inside, logabsdet, jnp.zeros_like(logabsdet))


def nsf_ar_forward(x, cond, packed):
    n, d = x.shape
    n_mid = len(packed["ahid"])
    kernel = functools.partial(nsf_ar_kernel, in_dim=d, k_bins=K,
                               n_mid=n_mid, tail_bound=B_BOUND)
    vmem = pl.BlockSpec(memory_space=pltpu.MemorySpace.VMEM)
    inputs = (x, cond, packed["a1"], *packed["ahid"], packed["aout"])
    # TODO(synk): for production batch sizes add a leading batch grid
    # (BlockSpec((Btile, d), lambda b: (b, 0)), dimension_semantics=("parallel",),
    # explicit vmem_limit_bytes) so v7x's two TensorCores split the batch; at
    # BATCH=8 the grid-less call avoids the ~0.35us/step grid overhead.
    z, ld = pl.pallas_call(
        kernel,
        out_shape=(jax.ShapeDtypeStruct((n, d), jnp.float32),
                   jax.ShapeDtypeStruct((n, d), jnp.float32)),
        in_specs=[vmem] * len(inputs),
        out_specs=(vmem, vmem),
    )(*inputs)
    return z, ld


# --------------------------- parameter construction -------------------------
def make_params(key, in_dim, n_nodes, hidden_layer, cond_dim, k_bins):
    n_mid = hidden_layer - 2
    d = in_dim
    f32 = jnp.float32
    all_keys = jax.random.split(key, 256)
    counter = iter(range(256))
    nk = lambda: all_keys[next(counter)]

    def lin(fan_in, shape):
        b = 1.0 / math.sqrt(fan_in)
        return jax.random.uniform(nk(), shape, dtype=f32, minval=-b, maxval=b)

    def cw(shape):
        return jax.random.uniform(nk(), shape, dtype=f32,
                                  minval=0.0, maxval=1.0) / math.sqrt(cond_dim)

    init_param = jax.random.uniform(nk(), (1, 3 * k_bins - 1), dtype=f32,
                                    minval=-0.5, maxval=0.5)
    w1 = jnp.zeros((d - 1, d, n_nodes), f32)          # (in, out); rows >= i are zero
    b1 = jnp.zeros((d - 1, 1, n_nodes), f32)
    cw1 = jnp.zeros((d - 1, cond_dim, n_nodes), f32)
    whid = jnp.zeros((d - 1, n_mid, n_nodes, n_nodes), f32)
    bhid = jnp.zeros((d - 1, n_mid, 1, n_nodes), f32)
    cwhid = jnp.zeros((d - 1, n_mid, cond_dim, n_nodes), f32)
    wout = jnp.zeros((d - 1, n_nodes, 3 * k_bins - 1), f32)
    bout = jnp.zeros((d - 1, 1, 3 * k_bins - 1), f32)
    cwout = jnp.zeros((d - 1, cond_dim, 3 * k_bins - 1), f32)

    for i in range(1, d):
        j = i - 1
        w1 = w1.at[j, :i, :].set(lin(i, (i, n_nodes)))
        b1 = b1.at[j, 0, :].set(lin(i, (n_nodes,)))
        cw1 = cw1.at[j].set(cw((cond_dim, n_nodes)))
        for l in range(n_mid):
            whid = whid.at[j, l].set(lin(n_nodes, (n_nodes, n_nodes)))
            bhid = bhid.at[j, l, 0].set(lin(n_nodes, (n_nodes,)))
            cwhid = cwhid.at[j, l].set(cw((cond_dim, n_nodes)))
        wout = wout.at[j].set(lin(n_nodes, (n_nodes, 3 * k_bins - 1)))
        bout = bout.at[j, 0].set(lin(n_nodes, (3 * k_bins - 1,)))
        cwout = cwout.at[j].set(cw((cond_dim, 3 * k_bins - 1)))

    return dict(init=init_param, w1=w1, b1=b1, cw1=cw1, whid=whid, bhid=bhid,
                cwhid=cwhid, wout=wout, bout=bout, cwout=cwout)


def pack_params(p, in_dim, n_nodes, cond_dim, k_bins):
    """Pack the (in_dim-1) conditioner MLPs into one weight matrix per layer.

    Each matrix stacks [weights; cond_weights; bias] along the contraction axis so
    the kernel runs `[h | cond | 1] @ A` (one MXU push per layer).  The output-layer
    matrix additionally covers ALL in_dim spline columns (column 0 = init_param,
    folded into the bias row) and permutes its output lanes into a k-major layout
    (lane = section_offset + k*in_dim + column) for the column-vectorized spline.
    """
    f32 = jnp.float32
    D = in_dim
    nn = n_nodes
    cd = cond_dim
    Kb = k_bins
    p_dim = 3 * Kb - 1
    nm = D - 1
    W = nm * nn
    n_mid = p["whid"].shape[1]

    a1 = jnp.concatenate([
        jnp.concatenate([p["w1"][j] for j in range(nm)], axis=1),   # (D, W)
        jnp.concatenate([p["cw1"][j] for j in range(nm)], axis=1),  # (cd, W)
        jnp.concatenate([p["b1"][j] for j in range(nm)], axis=1),   # (1, W)
    ], axis=0)

    ahid = []
    for l in range(n_mid):
        bd = jnp.zeros((W, W), f32)
        for j in range(nm):
            bd = bd.at[j * nn:(j + 1) * nn, j * nn:(j + 1) * nn].set(p["whid"][j, l])
        ahid.append(jnp.concatenate([
            bd,
            jnp.concatenate([p["cwhid"][j, l] for j in range(nm)], axis=1),
            jnp.concatenate([p["bhid"][j, l] for j in range(nm)], axis=1),
        ], axis=0))                                                 # (W+cd+1, W)

    # output layer, column-major lane order first (column 0 = init in the bias row)
    aout_std = jnp.zeros((W + cd + 1, D * p_dim), f32)
    aout_std = aout_std.at[W + cd, :p_dim].set(p["init"][0])
    for j in range(nm):
        i = j + 1
        c0 = i * p_dim
        aout_std = aout_std.at[j * nn:(j + 1) * nn, c0:c0 + p_dim].set(p["wout"][j])
        aout_std = aout_std.at[W:W + cd, c0:c0 + p_dim].set(p["cwout"][j])
        aout_std = aout_std.at[W + cd, c0:c0 + p_dim].set(p["bout"][j][0])
    # permute lanes to k-major: [W section | H section | D section], lane = k*D + col
    perm = []
    for q0, nk in ((0, Kb), (Kb, Kb), (2 * Kb, Kb - 1)):
        for k in range(nk):
            for i in range(D):
                perm.append(i * p_dim + q0 + k)
    aout = aout_std[:, jnp.array(perm, dtype=jnp.int32)]

    return dict(a1=a1, ahid=ahid, aout=aout)


# ------------------------------ pure-JAX reference ---------------------------
def _softmax_ref(x):
    m = jnp.max(x, axis=-1, keepdims=True)
    e = jnp.exp(x - m)
    return e / jnp.sum(e, axis=-1, keepdims=True)


def _rqs_forward_ref(x_col, Wn, Hn, Dpos, tail_bound):
    n, nb = Wn.shape
    f32 = jnp.float32
    cumW = jnp.cumsum(Wn, axis=-1)
    cumH = jnp.cumsum(Hn, axis=-1)
    xk = jnp.clip(x_col, -tail_bound, tail_bound)
    knots_right = -tail_bound + cumW
    knots_left = knots_right - Wn
    knots_bottom = -tail_bound + cumH - Hn
    internal = knots_right[:, :nb - 1]
    cnt = jnp.sum((xk >= internal).astype(f32), axis=-1, keepdims=True)
    kk = lax.broadcasted_iota(f32, (n, nb), 1)
    onehot = (kk == cnt).astype(f32)
    pick = lambda a: jnp.sum(onehot * a, axis=-1, keepdims=True)
    in_cw, in_w = pick(knots_left), pick(Wn)
    in_ch, in_h = pick(knots_bottom), pick(Hn)
    in_delta = in_h / in_w
    d_left_inner = jnp.sum(onehot[:, 1:] * Dpos, axis=-1, keepdims=True)
    d_right_inner = jnp.sum(onehot[:, :nb - 1] * Dpos, axis=-1, keepdims=True)
    is_first = (cnt == 0.0).astype(f32)
    is_last = (cnt == float(nb - 1)).astype(f32)
    d_k = is_first + (1.0 - is_first) * d_left_inner
    d_k1 = is_last + (1.0 - is_last) * d_right_inner
    theta = (xk - in_cw) / in_w
    t1mt = theta * (1.0 - theta)
    numerator = in_h * (in_delta * theta * theta + d_k * t1mt)
    denominator = in_delta + (d_k + d_k1 - 2.0 * in_delta) * t1mt
    y = in_ch + numerator / denominator
    dnum = in_delta * in_delta * (
        d_k1 * theta * theta + 2.0 * in_delta * t1mt + d_k * (1.0 - theta) ** 2)
    logabsdet = jnp.log(dnum) - 2.0 * jnp.log(denominator)
    inside = jnp.logical_and(x_col >= -tail_bound, x_col <= tail_bound)
    return jnp.where(inside, y, x_col), jnp.where(inside, logabsdet, 0.0)


def ref_forward(x, cond, p):
    n, d = x.shape
    n_mid = p["whid"].shape[1]
    mm = functools.partial(jnp.matmul, precision=_HI)
    z_cols, ld_cols = [], []
    for i in range(d):
        if i == 0:
            params = jnp.broadcast_to(p["init"], (n, 3 * K - 1))
        else:
            j = i - 1
            h = jnp.tanh(mm(x, p["w1"][j]) + p["b1"][j] + mm(cond, p["cw1"][j]))
            for l in range(n_mid):
                h = jnp.tanh(mm(h, p["whid"][j, l]) + p["bhid"][j, l]
                             + mm(cond, p["cwhid"][j, l]))
            params = mm(h, p["wout"][j]) + p["bout"][j] + mm(cond, p["cwout"][j])
        Wn = 2.0 * B_BOUND * _softmax_ref(params[:, :K])
        Hn = 2.0 * B_BOUND * _softmax_ref(params[:, K:2 * K])
        Dp = _softplus(params[:, 2 * K:3 * K - 1])
        z_col, ld_col = _rqs_forward_ref(x[:, i:i + 1], Wn, Hn, Dp, B_BOUND)
        z_cols.append(z_col)
        ld_cols.append(ld_col)
    return jnp.concatenate(z_cols, axis=1), jnp.concatenate(ld_cols, axis=1)


# ---------------------------------- main -------------------------------------
if __name__ == "__main__":
    key = jax.random.PRNGKey(0)
    kx, kc, kp = jax.random.split(key, 3)
    x = jax.random.uniform(kx, (BATCH, IN_DIM), jnp.float32, -1.5, 1.5)  # exercises tails
    cond = jax.random.normal(kc, (BATCH, COND_DIM), jnp.float32)
    params = make_params(kp, IN_DIM, N_NODES, HIDDEN_LAYER, COND_DIM, K)
    packed = pack_params(params, IN_DIM, N_NODES, COND_DIM, K)

    z, log_det = nsf_ar_forward(x, cond, packed)
    jax.block_until_ready((z, log_det))

    z_ref, ld_ref = ref_forward(x, cond, params)
    assert z.shape == (BATCH, IN_DIM) and log_det.shape == (BATCH, IN_DIM)
    assert bool(jnp.all(jnp.isfinite(z))) and bool(jnp.all(jnp.isfinite(log_det)))
    assert bool(jnp.allclose(z, z_ref, atol=5e-3, rtol=5e-3)), "z mismatch vs reference"
    assert bool(jnp.allclose(log_det, ld_ref, atol=5e-3, rtol=5e-3)), "log_det mismatch vs reference"
    print("KERNEL_OK")
</pallas_src>

<mosaic_0001>
module attributes {stable_mosaic.version = 11 : i64} {
  func.func @nsf_ar_kernel(%arg0: memref<8x6xf32, #tpu.memory_space<vmem>>, %arg1: memref<8x6xf32, #tpu.memory_space<vmem>>, %arg2: memref<13x160xf32, #tpu.memory_space<vmem>>, %arg3: memref<167x160xf32, #tpu.memory_space<vmem>>, %arg4: memref<167x84xf32, #tpu.memory_space<vmem>>, %arg5: memref<8x6xf32, #tpu.memory_space<vmem>>, %arg6: memref<8x6xf32, #tpu.memory_space<vmem>>) attributes {dimension_semantics = [], scalar_prefetch = 0 : i64, scratch_operands = 0 : i64, tpu.core_type = #tpu.core_type<tc>} {
    %c0 = arith.constant 0 : index
    %c0_0 = arith.constant 0 : index
    %0 = vector.load %arg0[%c0, %c0_0] : memref<8x6xf32, #tpu.memory_space<vmem>>, vector<8x6xf32>
    %c0_1 = arith.constant 0 : index
    %c0_2 = arith.constant 0 : index
    %1 = vector.load %arg1[%c0_1, %c0_2] : memref<8x6xf32, #tpu.memory_space<vmem>>, vector<8x6xf32>
    %cst = arith.constant 1.000000e+00 : f32
    %2 = vector.broadcast %cst : f32 to vector<8x1xf32>
    %3 = tpu.concatenate %0, %1, %2 in 1 : vector<8x6xf32>, vector<8x6xf32>, vector<8x1xf32> -> vector<8x13xf32>
    %c0_3 = arith.constant 0 : index
    %c0_4 = arith.constant 0 : index
    %4 = vector.load %arg2[%c0_3, %c0_4] : memref<13x160xf32, #tpu.memory_space<vmem>>, vector<13x160xf32>
    %cst_5 = arith.constant dense<0.000000e+00> : vector<8x160xf32>
    %5 = tpu.matmul %3, %4, %cst_5 {dimension_numbers = #tpu.dot_dimension_numbers<[1], [0], [0], [1], [0, 0, 1, 1], [], []>, precision = #tpu.contract_precision<fp32>} : vector<8x13xf32>, vector<13x160xf32>, vector<8x160xf32> -> vector<8x160xf32>
    %6 = math.tanh %5 : vector<8x160xf32>
    %7 = tpu.concatenate %6, %1, %2 in 1 : vector<8x160xf32>, vector<8x6xf32>, vector<8x1xf32> -> vector<8x167xf32>
    %c0_6 = arith.constant 0 : index
    %c0_7 = arith.constant 0 : index
    %8 = vector.load %arg3[%c0_6, %c0_7] : memref<167x160xf32, #tpu.memory_space<vmem>>, vector<167x160xf32>
    %cst_8 = arith.constant dense<0.000000e+00> : vector<8x160xf32>
    %9 = tpu.matmul %7, %8, %cst_8 {dimension_numbers = #tpu.dot_dimension_numbers<[1], [0], [0], [1], [0, 0, 1, 1], [], []>, precision = #tpu.contract_precision<fp32>} : vector<8x167xf32>, vector<167x160xf32>, vector<8x160xf32> -> vector<8x160xf32>
    %10 = math.tanh %9 : vector<8x160xf32>
    %11 = tpu.concatenate %10, %1, %2 in 1 : vector<8x160xf32>, vector<8x6xf32>, vector<8x1xf32> -> vector<8x167xf32>
    %c0_9 = arith.constant 0 : index
    %c0_10 = arith.constant 0 : index
    %12 = vector.load %arg4[%c0_9, %c0_10] : memref<167x84xf32, #tpu.memory_space<vmem>>, vector<167x84xf32>
    %cst_11 = arith.constant dense<0.000000e+00> : vector<8x84xf32>
    %13 = tpu.matmul %11, %12, %cst_11 {dimension_numbers = #tpu.dot_dimension_numbers<[1], [0], [0], [1], [0, 0, 1, 1], [], []>, precision = #tpu.contract_precision<fp32>} : vector<8x167xf32>, vector<167x84xf32>, vector<8x84xf32> -> vector<8x84xf32>
    %14 = vector.extract_strided_slice %13 {offsets = [0, 0], sizes = [8, 30], strides = [1, 1]} : vector<8x84xf32> to vector<8x30xf32>
    %15 = vector.extract_strided_slice %13 {offsets = [0, 30], sizes = [8, 30], strides = [1, 1]} : vector<8x84xf32> to vector<8x30xf32>
    %16 = vector.extract_strided_slice %13 {offsets = [0, 60], sizes = [8, 24], strides = [1, 1]} : vector<8x84xf32> to vector<8x24xf32>
    %17 = vector.extract_strided_slice %14 {offsets = [0, 0], sizes = [8, 6], strides = [1, 1]} : vector<8x30xf32> to vector<8x6xf32>
    %18 = vector.extract_strided_slice %15 {offsets = [0, 0], sizes = [8, 6], strides = [1, 1]} : vector<8x30xf32> to vector<8x6xf32>
    %19 = vector.extract_strided_slice %14 {offsets = [0, 6], sizes = [8, 6], strides = [1, 1]} : vector<8x30xf32> to vector<8x6xf32>
    %20 = arith.maximumf %17, %19 : vector<8x6xf32>
    %21 = vector.extract_strided_slice %15 {offsets = [0, 6], sizes = [8, 6], strides = [1, 1]} : vector<8x30xf32> to vector<8x6xf32>
    %22 = arith.maximumf %18, %21 : vector<8x6xf32>
    %23 = vector.extract_strided_slice %14 {offsets = [0, 12], sizes = [8, 6], strides = [1, 1]} : vector<8x30xf32> to vector<8x6xf32>
    %24 = arith.maximumf %20, %23 : vector<8x6xf32>
    %25 = vector.extract_strided_slice %15 {offsets = [0, 12], sizes = [8, 6], strides = [1, 1]} : vector<8x30xf32> to vector<8x6xf32>
    %26 = arith.maximumf %22, %25 : vector<8x6xf32>
    %27 = vector.extract_strided_slice %14 {offsets = [0, 18], sizes = [8, 6], strides = [1, 1]} : vector<8x30xf32> to vector<8x6xf32>
    %28 = arith.maximumf %24, %27 : vector<8x6xf32>
    %29 = vector.extract_strided_slice %15 {offsets = [0, 18], sizes = [8, 6], strides = [1, 1]} : vector<8x30xf32> to vector<8x6xf32>
    %30 = arith.maximumf %26, %29 : vector<8x6xf32>
    %31 = vector.extract_strided_slice %14 {offsets = [0, 24], sizes = [8, 6], strides = [1, 1]} : vector<8x30xf32> to vector<8x6xf32>
    %32 = arith.maximumf %28, %31 : vector<8x6xf32>
    %33 = vector.extract_strided_slice %15 {offsets = [0, 24], sizes = [8, 6], strides = [1, 1]} : vector<8x30xf32> to vector<8x6xf32>
    %34 = arith.maximumf %30, %33 : vector<8x6xf32>
    %35 = tpu.concatenate %32, %32, %32, %32, %32 in 1 : vector<8x6xf32>, vector<8x6xf32>, vector<8x6xf32>, vector<8x6xf32>, vector<8x6xf32> -> vector<8x30xf32>
    %36 = tpu.concatenate %34, %34, %34, %34, %34 in 1 : vector<8x6xf32>, vector<8x6xf32>, vector<8x6xf32>, vector<8x6xf32>, vector<8x6xf32> -> vector<8x30xf32>
    %37 = arith.subf %14, %35 : vector<8x30xf32>
    %38 = arith.subf %15, %36 : vector<8x30xf32>
    %39 = math.absf %16 : vector<8x24xf32>
    %cst_12 = arith.constant 0.000000e+00 : f32
    %40 = vector.broadcast %cst_12 : f32 to vector<8x24xf32>
    %41 = arith.subf %40, %39 : vector<8x24xf32>
    %42 = tpu.concatenate %37, %38, %41 in 1 : vector<8x30xf32>, vector<8x30xf32>, vector<8x24xf32> -> vector<8x84xf32>
    %43 = math.exp %42 : vector<8x84xf32>
    %44 = vector.extract_strided_slice %43 {offsets = [0, 0], sizes = [8, 30], strides = [1, 1]} : vector<8x84xf32> to vector<8x30xf32>
    %45 = vector.extract_strided_slice %43 {offsets = [0, 30], sizes = [8, 30], strides = [1, 1]} : vector<8x84xf32> to vector<8x30xf32>
    %46 = vector.extract_strided_slice %43 {offsets = [0, 60], sizes = [8, 24], strides = [1, 1]} : vector<8x84xf32> to vector<8x24xf32>
    %47 = vector.extract_strided_slice %44 {offsets = [0, 0], sizes = [8, 6], strides = [1, 1]} : vector<8x30xf32> to vector<8x6xf32>
    %48 = vector.extract_strided_slice %45 {offsets = [0, 0], sizes = [8, 6], strides = [1, 1]} : vector<8x30xf32> to vector<8x6xf32>
    %49 = vector.extract_strided_slice %44 {offsets = [0, 6], sizes = [8, 6], strides = [1, 1]} : vector<8x30xf32> to vector<8x6xf32>
    %50 = arith.addf %47, %49 : vector<8x6xf32>
    %51 = vector.extract_strided_slice %45 {offsets = [0, 6], sizes = [8, 6], strides = [1, 1]} : vector<8x30xf32> to vector<8x6xf32>
    %52 = arith.addf %48, %51 : vector<8x6xf32>
    %53 = vector.extract_strided_slice %44 {offsets = [0, 12], sizes = [8, 6], strides = [1, 1]} : vector<8x30xf32> to vector<8x6xf32>
    %54 = arith.addf %50, %53 : vector<8x6xf32>
    %55 = vector.extract_strided_slice %45 {offsets = [0, 12], sizes = [8, 6], strides = [1, 1]} : vector<8x30xf32> to vector<8x6xf32>
    %56 = arith.addf %52, %55 : vector<8x6xf32>
    %57 = vector.extract_strided_slice %44 {offsets = [0, 18], sizes = [8, 6], strides = [1, 1]} : vector<8x30xf32> to vector<8x6xf32>
    %58 = arith.addf %54, %57 : vector<8x6xf32>
    %59 = vector.extract_strided_slice %45 {offsets = [0, 18], sizes = [8, 6], strides = [1, 1]} : vector<8x30xf32> to vector<8x6xf32>
    %60 = arith.addf %56, %59 : vector<8x6xf32>
    %61 = vector.extract_strided_slice %44 {offsets = [0, 24], sizes = [8, 6], strides = [1, 1]} : vector<8x30xf32> to vector<8x6xf32>
    %62 = arith.addf %58, %61 : vector<8x6xf32>
    %63 = vector.extract_strided_slice %45 {offsets = [0, 24], sizes = [8, 6], strides = [1, 1]} : vector<8x30xf32> to vector<8x6xf32>
    %64 = arith.addf %60, %63 : vector<8x6xf32>
    %65 = tpu.concatenate %62, %64 in 1 : vector<8x6xf32>, vector<8x6xf32> -> vector<8x12xf32>
    %cst_13 = arith.constant 2.000000e+00 : f32
    %66 = vector.broadcast %cst_13 : f32 to vector<8x12xf32>
    %67 = arith.divf %66, %65 : vector<8x12xf32>
    %68 = vector.extract_strided_slice %67 {offsets = [0, 0], sizes = [8, 6], strides = [1, 1]} : vector<8x12xf32> to vector<8x6xf32>
    %69 = vector.extract_strided_slice %67 {offsets = [0, 6], sizes = [8, 6], strides = [1, 1]} : vector<8x12xf32> to vector<8x6xf32>
    %70 = vector.extract_strided_slice %44 {offsets = [0, 0], sizes = [8, 6], strides = [1, 1]} : vector<8x30xf32> to vector<8x6xf32>
    %71 = arith.mulf %70, %68 : vector<8x6xf32>
    %72 = vector.extract_strided_slice %44 {offsets = [0, 6], sizes = [8, 6], strides = [1, 1]} : vector<8x30xf32> to vector<8x6xf32>
    %73 = arith.mulf %72, %68 : vector<8x6xf32>
    %74 = vector.extract_strided_slice %44 {offsets = [0, 12], sizes = [8, 6], strides = [1, 1]} : vector<8x30xf32> to vector<8x6xf32>
    %75 = arith.mulf %74, %68 : vector<8x6xf32>
    %76 = vector.extract_strided_slice %44 {offsets = [0, 18], sizes = [8, 6], strides = [1, 1]} : vector<8x30xf32> to vector<8x6xf32>
    %77 = arith.mulf %76, %68 : vector<8x6xf32>
    %78 = vector.extract_strided_slice %44 {offsets = [0, 24], sizes = [8, 6], strides = [1, 1]} : vector<8x30xf32> to vector<8x6xf32>
    %79 = arith.mulf %78, %68 : vector<8x6xf32>
    %80 = vector.extract_strided_slice %45 {offsets = [0, 0], sizes = [8, 6], strides = [1, 1]} : vector<8x30xf32> to vector<8x6xf32>
    %81 = arith.mulf %80, %69 : vector<8x6xf32>
    %82 = vector.extract_strided_slice %45 {offsets = [0, 6], sizes = [8, 6], strides = [1, 1]} : vector<8x30xf32> to vector<8x6xf32>
    %83 = arith.mulf %82, %69 : vector<8x6xf32>
    %84 = vector.extract_strided_slice %45 {offsets = [0, 12], sizes = [8, 6], strides = [1, 1]} : vector<8x30xf32> to vector<8x6xf32>
    %85 = arith.mulf %84, %69 : vector<8x6xf32>
    %86 = vector.extract_strided_slice %45 {offsets = [0, 18], sizes = [8, 6], strides = [1, 1]} : vector<8x30xf32> to vector<8x6xf32>
    %87 = arith.mulf %86, %69 : vector<8x6xf32>
    %88 = vector.extract_strided_slice %45 {offsets = [0, 24], sizes = [8, 6], strides = [1, 1]} : vector<8x30xf32> to vector<8x6xf32>
    %89 = arith.mulf %88, %69 : vector<8x6xf32>
    %cst_14 = arith.constant 0.000000e+00 : f32
    %90 = vector.broadcast %cst_14 : f32 to vector<8x24xf32>
    %91 = arith.maximumf %16, %90 : vector<8x24xf32>
    %cst_15 = arith.constant 1.000000e+00 : f32
    %92 = vector.broadcast %cst_15 : f32 to vector<8x24xf32>
    %93 = arith.addf %92, %46 : vector<8x24xf32>
    %94 = math.log %93 : vector<8x24xf32>
    %95 = arith.addf %91, %94 : vector<8x24xf32>
    %96 = arith.addf %71, %73 : vector<8x6xf32>
    %97 = arith.addf %81, %83 : vector<8x6xf32>
    %98 = arith.addf %96, %75 : vector<8x6xf32>
    %99 = arith.addf %97, %85 : vector<8x6xf32>
    %100 = arith.addf %98, %77 : vector<8x6xf32>
    %101 = arith.addf %99, %87 : vector<8x6xf32>
    %102 = arith.addf %100, %79 : vector<8x6xf32>
    %103 = arith.addf %101, %89 : vector<8x6xf32>
    %cst_16 = arith.constant 1.000000e+00 : f32
    %104 = vector.broadcast %cst_16 : f32 to vector<8x6xf32>
    %105 = arith.subf %71, %104 : vector<8x6xf32>
    %cst_17 = arith.constant 1.000000e+00 : f32
    %106 = vector.broadcast %cst_17 : f32 to vector<8x6xf32>
    %107 = arith.subf %96, %106 : vector<8x6xf32>
    %cst_18 = arith.constant 1.000000e+00 : f32
    %108 = vector.broadcast %cst_18 : f32 to vector<8x6xf32>
    %109 = arith.subf %98, %108 : vector<8x6xf32>
    %cst_19 = arith.constant 1.000000e+00 : f32
    %110 = vector.broadcast %cst_19 : f32 to vector<8x6xf32>
    %111 = arith.subf %100, %110 : vector<8x6xf32>
    %cst_20 = arith.constant 1.000000e+00 : f32
    %112 = vector.broadcast %cst_20 : f32 to vector<8x6xf32>
    %113 = arith.subf %102, %112 : vector<8x6xf32>
    %114 = arith.subf %105, %71 : vector<8x6xf32>
    %115 = arith.subf %107, %73 : vector<8x6xf32>
    %116 = arith.subf %109, %75 : vector<8x6xf32>
    %117 = arith.subf %111, %77 : vector<8x6xf32>
    %118 = arith.subf %113, %79 : vector<8x6xf32>
    %cst_21 = arith.constant 1.000000e+00 : f32
    %119 = vector.broadcast %cst_21 : f32 to vector<8x6xf32>
    %120 = arith.subf %81, %119 : vector<8x6xf32>
    %121 = arith.subf %120, %81 : vector<8x6xf32>
    %cst_22 = arith.constant 1.000000e+00 : f32
    %122 = vector.broadcast %cst_22 : f32 to vector<8x6xf32>
    %123 = arith.subf %97, %122 : vector<8x6xf32>
    %124 = arith.subf %123, %83 : vector<8x6xf32>
    %cst_23 = arith.constant 1.000000e+00 : f32
    %125 = vector.broadcast %cst_23 : f32 to vector<8x6xf32>
    %126 = arith.subf %99, %125 : vector<8x6xf32>
    %127 = arith.subf %126, %85 : vector<8x6xf32>
    %cst_24 = arith.constant 1.000000e+00 : f32
    %128 = vector.broadcast %cst_24 : f32 to vector<8x6xf32>
    %129 = arith.subf %101, %128 : vector<8x6xf32>
    %130 = arith.subf %129, %87 : vector<8x6xf32>
    %cst_25 = arith.constant 1.000000e+00 : f32
    %131 = vector.broadcast %cst_25 : f32 to vector<8x6xf32>
    %132 = arith.subf %103, %131 : vector<8x6xf32>
    %133 = arith.subf %132, %89 : vector<8x6xf32>
    %cst_26 = arith.constant -1.000000e+00 : f32
    %cst_27 = arith.constant 1.000000e+00 : f32
    %134 = vector.broadcast %cst_26 : f32 to vector<8x6xf32>
    %135 = arith.maximumf %134, %0 : vector<8x6xf32>
    %136 = vector.broadcast %cst_27 : f32 to vector<8x6xf32>
    %137 = arith.minimumf %136, %135 : vector<8x6xf32>
    %138 = arith.cmpf oge, %137, %105 : vector<8x6xf32>
    %139 = arith.extui %138 : vector<8x6xi1> to vector<8x6xi32>
    %140 = arith.sitofp %139 : vector<8x6xi32> to vector<8x6xf32>
    %141 = arith.cmpf oge, %137, %107 : vector<8x6xf32>
    %142 = arith.extui %141 : vector<8x6xi1> to vector<8x6xi32>
    %143 = arith.sitofp %142 : vector<8x6xi32> to vector<8x6xf32>
    %144 = arith.addf %140, %143 : vector<8x6xf32>
    %145 = arith.cmpf oge, %137, %109 : vector<8x6xf32>
    %146 = arith.extui %145 : vector<8x6xi1> to vector<8x6xi32>
    %147 = arith.sitofp %146 : vector<8x6xi32> to vector<8x6xf32>
    %148 = arith.addf %144, %147 : vector<8x6xf32>
    %149 = arith.cmpf oge, %137, %111 : vector<8x6xf32>
    %150 = arith.extui %149 : vector<8x6xi1> to vector<8x6xi32>
    %151 = arith.sitofp %150 : vector<8x6xi32> to vector<8x6xf32>
    %152 = arith.addf %148, %151 : vector<8x6xf32>
    %cst_28 = arith.constant 0.000000e+00 : f32
    %153 = vector.broadcast %cst_28 : f32 to vector<8x6xf32>
    %154 = arith.cmpf oeq, %152, %153 : vector<8x6xf32>
    %155 = arith.extui %154 : vector<8x6xi1> to vector<8x6xi32>
    %156 = arith.sitofp %155 : vector<8x6xi32> to vector<8x6xf32>
    %cst_29 = arith.constant 1.000000e+00 : f32
    %157 = vector.broadcast %cst_29 : f32 to vector<8x6xf32>
    %158 = arith.cmpf oeq, %152, %157 : vector<8x6xf32>
    %159 = arith.extui %158 : vector<8x6xi1> to vector<8x6xi32>
    %160 = arith.sitofp %159 : vector<8x6xi32> to vector<8x6xf32>
    %cst_30 = arith.constant 2.000000e+00 : f32
    %161 = vector.broadcast %cst_30 : f32 to vector<8x6xf32>
    %162 = arith.cmpf oeq, %152, %161 : vector<8x6xf32>
    %163 = arith.extui %162 : vector<8x6xi1> to vector<8x6xi32>
    %164 = arith.sitofp %163 : vector<8x6xi32> to vector<8x6xf32>
    %cst_31 = arith.constant 3.000000e+00 : f32
    %165 = vector.broadcast %cst_31 : f32 to vector<8x6xf32>
    %166 = arith.cmpf oeq, %152, %165 : vector<8x6xf32>
    %167 = arith.extui %166 : vector<8x6xi1> to vector<8x6xi32>
    %168 = arith.sitofp %167 : vector<8x6xi32> to vector<8x6xf32>
    %cst_32 = arith.constant 4.000000e+00 : f32
    %169 = vector.broadcast %cst_32 : f32 to vector<8x6xf32>
    %170 = arith.cmpf oeq, %152, %169 : vector<8x6xf32>
    %171 = arith.extui %170 : vector<8x6xi1> to vector<8x6xi32>
    %172 = arith.sitofp %171 : vector<8x6xi32> to vector<8x6xf32>
    %173 = arith.mulf %156, %114 : vector<8x6xf32>
    %174 = arith.mulf %160, %115 : vector<8x6xf32>
    %175 = arith.addf %173, %174 : vector<8x6xf32>
    %176 = arith.mulf %164, %116 : vector<8x6xf32>
    %177 = arith.addf %175, %176 : vector<8x6xf32>
    %178 = arith.mulf %168, %117 : vector<8x6xf32>
    %179 = arith.addf %177, %178 : vector<8x6xf32>
    %180 = arith.mulf %172, %118 : vector<8x6xf32>
    %181 = arith.addf %179, %180 : vector<8x6xf32>
    %182 = arith.mulf %156, %71 : vector<8x6xf32>
    %183 = arith.mulf %160, %73 : vector<8x6xf32>
    %184 = arith.addf %182, %183 : vector<8x6xf32>
    %185 = arith.mulf %164, %75 : vector<8x6xf32>
    %186 = arith.addf %184, %185 : vector<8x6xf32>
    %187 = arith.mulf %168, %77 : vector<8x6xf32>
    %188 = arith.addf %186, %187 : vector<8x6xf32>
    %189 = arith.mulf %172, %79 : vector<8x6xf32>
    %190 = arith.addf %188, %189 : vector<8x6xf32>
    %191 = arith.mulf %156, %121 : vector<8x6xf32>
    %192 = arith.mulf %160, %124 : vector<8x6xf32>
    %193 = arith.addf %191, %192 : vector<8x6xf32>
    %194 = arith.mulf %164, %127 : vector<8x6xf32>
    %195 = arith.addf %193, %194 : vector<8x6xf32>
    %196 = arith.mulf %168, %130 : vector<8x6xf32>
    %197 = arith.addf %195, %196 : vector<8x6xf32>
    %198 = arith.mulf %172, %133 : vector<8x6xf32>
    %199 = arith.addf %197, %198 : vector<8x6xf32>
    %200 = arith.mulf %156, %81 : vector<8x6xf32>
    %201 = arith.mulf %160, %83 : vector<8x6xf32>
    %202 = arith.addf %200, %201 : vector<8x6xf32>
    %203 = arith.mulf %164, %85 : vector<8x6xf32>
    %204 = arith.addf %202, %203 : vector<8x6xf32>
    %205 = arith.mulf %168, %87 : vector<8x6xf32>
    %206 = arith.addf %204, %205 : vector<8x6xf32>
    %207 = arith.mulf %172, %89 : vector<8x6xf32>
    %208 = arith.addf %206, %207 : vector<8x6xf32>
    %209 = vector.extract_strided_slice %95 {offsets = [0, 0], sizes = [8, 6], strides = [1, 1]} : vector<8x24xf32> to vector<8x6xf32>
    %210 = arith.mulf %160, %209 : vector<8x6xf32>
    %211 = arith.addf %156, %210 : vector<8x6xf32>
    %212 = arith.mulf %156, %209 : vector<8x6xf32>
    %213 = arith.addf %172, %212 : vector<8x6xf32>
    %214 = vector.extract_strided_slice %95 {offsets = [0, 6], sizes = [8, 6], strides = [1, 1]} : vector<8x24xf32> to vector<8x6xf32>
    %215 = arith.mulf %164, %214 : vector<8x6xf32>
    %216 = arith.addf %211, %215 : vector<8x6xf32>
    %217 = arith.mulf %160, %214 : vector<8x6xf32>
    %218 = arith.addf %213, %217 : vector<8x6xf32>
    %219 = vector.extract_strided_slice %95 {offsets = [0, 12], sizes = [8, 6], strides = [1, 1]} : vector<8x24xf32> to vector<8x6xf32>
    %220 = arith.mulf %168, %219 : vector<8x6xf32>
    %221 = arith.addf %216, %220 : vector<8x6xf32>
    %222 = arith.mulf %164, %219 : vector<8x6xf32>
    %223 = arith.addf %218, %222 : vector<8x6xf32>
    %224 = vector.extract_strided_slice %95 {offsets = [0, 18], sizes = [8, 6], strides = [1, 1]} : vector<8x24xf32> to vector<8x6xf32>
    %225 = arith.mulf %172, %224 : vector<8x6xf32>
    %226 = arith.addf %221, %225 : vector<8x6xf32>
    %227 = arith.mulf %168, %224 : vector<8x6xf32>
    %228 = arith.addf %223, %227 : vector<8x6xf32>
    %cst_33 = arith.constant 1.000000e+00 : f32
    %229 = vector.broadcast %cst_33 : f32 to vector<8x6xf32>
    %230 = arith.divf %229, %190 : vector<8x6xf32>
    %231 = arith.mulf %208, %230 : vector<8x6xf32>
    %232 = arith.subf %137, %181 : vector<8x6xf32>
    %233 = arith.mulf %232, %230 : vector<8x6xf32>
    %cst_34 = arith.constant 1.000000e+00 : f32
    %234 = vector.broadcast %cst_34 : f32 to vector<8x6xf32>
    %235 = arith.subf %234, %233 : vector<8x6xf32>
    %236 = arith.mulf %233, %235 : vector<8x6xf32>
    %237 = arith.mulf %231, %233 : vector<8x6xf32>
    %238 = arith.mulf %237, %233 : vector<8x6xf32>
    %239 = arith.mulf %226, %236 : vector<8x6xf32>
    %240 = arith.addf %238, %239 : vector<8x6xf32>
    %241 = arith.mulf %208, %240 : vector<8x6xf32>
    %242 = arith.addf %226, %228 : vector<8x6xf32>
    %cst_35 = arith.constant 2.000000e+00 : f32
    %243 = vector.broadcast %cst_35 : f32 to vector<8x6xf32>
    %244 = arith.mulf %243, %231 : vector<8x6xf32>
    %245 = arith.subf %242, %244 : vector<8x6xf32>
    %246 = arith.mulf %245, %236 : vector<8x6xf32>
    %247 = arith.addf %231, %246 : vector<8x6xf32>
    %cst_36 = arith.constant 1.000000e+00 : f32
    %248 = vector.broadcast %cst_36 : f32 to vector<8x6xf32>
    %249 = arith.divf %248, %247 : vector<8x6xf32>
    %250 = arith.mulf %241, %249 : vector<8x6xf32>
    %251 = arith.addf %199, %250 : vector<8x6xf32>
    %252 = arith.mulf %231, %231 : vector<8x6xf32>
    %253 = arith.mulf %228, %233 : vector<8x6xf32>
    %254 = arith.mulf %253, %233 : vector<8x6xf32>
    %cst_37 = arith.constant 2.000000e+00 : f32
    %255 = vector.broadcast %cst_37 : f32 to vector<8x6xf32>
    %256 = arith.mulf %255, %231 : vector<8x6xf32>
    %257 = arith.mulf %256, %236 : vector<8x6xf32>
    %258 = arith.addf %254, %257 : vector<8x6xf32>
    %cst_38 = arith.constant 1.000000e+00 : f32
    %259 = vector.broadcast %cst_38 : f32 to vector<8x6xf32>
    %260 = arith.subf %259, %233 : vector<8x6xf32>
    %261 = arith.mulf %226, %260 : vector<8x6xf32>
    %cst_39 = arith.constant 1.000000e+00 : f32
    %262 = vector.broadcast %cst_39 : f32 to vector<8x6xf32>
    %263 = arith.subf %262, %233 : vector<8x6xf32>
    %264 = arith.mulf %261, %263 : vector<8x6xf32>
    %265 = arith.addf %258, %264 : vector<8x6xf32>
    %266 = arith.mulf %252, %265 : vector<8x6xf32>
    %267 = arith.mulf %266, %249 : vector<8x6xf32>
    %268 = arith.mulf %267, %249 : vector<8x6xf32>
    %269 = math.log %268 : vector<8x6xf32>
    %cst_40 = arith.constant -1.000000e+00 : f32
    %270 = vector.broadcast %cst_40 : f32 to vector<8x6xf32>
    %271 = arith.cmpf oge, %0, %270 : vector<8x6xf32>
    %cst_41 = arith.constant 1.000000e+00 : f32
    %272 = vector.broadcast %cst_41 : f32 to vector<8x6xf32>
    %273 = arith.cmpf ole, %0, %272 : vector<8x6xf32>
    %274 = arith.andi %271, %273 : vector<8x6xi1>
    %275 = arith.select %274, %251, %0 : vector<8x6xi1>, vector<8x6xf32>
    %c0_42 = arith.constant 0 : index
    %c0_43 = arith.constant 0 : index
    %276 = vector.load %arg5[%c0_42, %c0_43] : memref<8x6xf32, #tpu.memory_space<vmem>>, vector<8x6xf32>
    tpu.vector_store %arg5[%c0_42, %c0_43], %275 {strides = array<i32>} : memref<8x6xf32, #tpu.memory_space<vmem>>, vector<8x6xf32>,
    %cst_44 = arith.constant 0.000000e+00 : f32
    %277 = vector.broadcast %cst_44 : f32 to vector<8x6xf32>
    %278 = arith.select %274, %269, %277 : vector<8x6xi1>, vector<8x6xf32>
    %c0_45 = arith.constant 0 : index
    %c0_46 = arith.constant 0 : index
    %279 = vector.load %arg6[%c0_45, %c0_46] : memref<8x6xf32, #tpu.memory_space<vmem>>, vector<8x6xf32>
    tpu.vector_store %arg6[%c0_45, %c0_46], %278 {strides = array<i32>} : memref<8x6xf32, #tpu.memory_space<vmem>>, vector<8x6xf32>,
    return
  }
}

</mosaic_0001>

<bundles_post_ra>
// kernel: tpu_custom_call.1
= control target key start
LH: loop header
LB: loop body
LE: loop exit
PB: predicated region body
PF: predicated region fallthrough
CT: control target
= control target key end

     0   :  { %12 = vsyncpa [#allocation3], 0  ;;  %s3332_s23 = smov 6   ;;  %vm42_vm0 = vcmask 1044480   ;;  %v4874_v10 = vmov 0.0   ;;  %s4867_s0 = inlined_call_operand.vmem [shape: f32[8,6], index: 0, kind: input, shape index: {}]   ;;  %s4868_s1 = inlined_call_operand.vmem [shape: f32[8,6], index: 1, kind: input, shape index: {}]   ;;  %s4869_s2 = inlined_call_operand.vmem [shape: f32[13,160], index: 2, kind: input, shape index: {}]   ;;  %s4870_s3 = inlined_call_operand.vmem [shape: f32[167,160], index: 3, kind: input, shape index: {}]   ;;  %s4871_s4 = inlined_call_operand.vmem [shape: f32[167,84], index: 4, kind: input, shape index: {}]   ;;  %s4872_s5 = inlined_call_operand.hbm [shape: f32[8,6], index: 5, kind: output, shape index: {0}]   ;;  %s4873_s6 = inlined_call_operand.hbm [shape: f32[8,6], index: 6, kind: output, shape index: {1}]  }
   0x1   :  { %v25_v0 = vld [vmem:[%s4868_s1] sm:$0xff]  ;;  %v35_v1 = vld [vmem:[%s4869_s2 + $0x8] sm:$0xff]  ;;  %v37_v2 = vld [vmem:[%s4869_s2 + $0x18] sm:$0x1f]  ;;  %370 = vmatprep.mubr.f32.mxu0 %v4874_v10  ;;  %117 = vmatprep.mubr.f32.mxu1 %v4874_v10 }
   0x2   :  { %27 = vrot.lane.b32.xlu0 %v25_v0, %s3332_s23  ;;  %v34_v3 = vld [vmem:[%s4869_s2] sm:$0xff]  ;;  %v47_v4 = vsel %vm42_vm0, %v37_v2, 0  ;;  %v49_v5 = vand.u32 4294901760, %v35_v1  ;;  %v36_v6 = vld [vmem:[%s4869_s2 + $0x10] sm:$0x1f] }
   0x3   :  { %v51_v7 = vand.u32 4294901760, %v34_v3  ;;  %v53_v8 = vand.u32 4294901760, %v47_v4  ;;  %v44_v9 = vsel %vm42_vm0, %v36_v6, 0 }
   0x4   :  { %13 = vsyncpa [#allocation5], 0  ;;  %v3411_v11 = vsub.f32 %v35_v1, %v49_v5  ;;  %v55_v12 = vand.u32 4294901760, %v44_v9  ;;  %v3442_v36 = vld [vmem:[%s4870_s3 + $0x8] sm:$0xff]  ;;  %v552_v37 = vld [vmem:[%s4870_s3 + $0x18] sm:$0xff]  ;;  %s3334_s12 = smov 32  }
   0x5   :  { %v3413_v13 = vsub.f32 %v34_v3, %v51_v7  ;;  %v3415_v14 = vpack.c.bf16 %v53_v8, %v49_v5  ;;  %v3417_v15 = vsub.f32 %v47_v4, %v53_v8  ;;  %v3450_v38 = vld [vmem:[%s4870_s3] sm:$0xff]  ;;  %v602_v39 = vand.u32 4294901760, %v3442_v36  ;;  %v551_v41 = vld [vmem:[%s4870_s3 + $0x10] sm:$0xff]  ;;  %v554_v43 = vld [vmem:[%s4870_s3 + $0x28] sm:$0xff]  ;;  %s3337_s8 = smov 122   ;;  %s3338_s9 = smov 116  }
   0x6   :  { %v3419_v16 = vpack.c.bf16 %v55_v12, %v51_v7  ;;  %v3421_v17 = vsub.f32 %v44_v9, %v55_v12  ;;  %v131_v18 = vand.u32 4294901760, %v3411_v11  ;;  %542 = vrot.lane.b32.xlu0 %v25_v0, %s3334_s12  ;;  %v606_v40 = vand.u32 4294901760, %v552_v37  ;;  %v556_v44 = vld [vmem:[%s4870_s3 + $0x38] sm:$0xff]  ;;  %v553_v47 = vld [vmem:[%s4870_s3 + $0x20] sm:$0xff]  ;;  %v555_v48 = vld [vmem:[%s4870_s3 + $0x30] sm:$0xff]  ;;  %s3339_s10 = smov 104  }
   0x7   :  { %v137_v19 = vand.u32 4294901760, %v3413_v13  ;;  %2776 = vmatprep.subr.bf16.mxu0 %v3415_v14  ;;  %2764 = vmatprep.subr.bf16.mxu1 %v3415_v14  ;;  %v143_v20 = vand.u32 4294901760, %v3417_v15  ;;  %v2771_v21 = vpack.c.bf16 %v3417_v15, %v3411_v11  ;;  %v604_v42 = vand.u32 4294901760, %v3450_v38  ;;  %v558_v58 = vld [vmem:[%s4870_s3 + $0x48] sm:$0xff]  ;;  %v560_v59 = vld [vmem:[%s4870_s3 + $0x58] sm:$0xff]  ;;  %v557_v62 = vld [vmem:[%s4870_s3 + $0x40] sm:$0xff] }
   0x8   :  { %2778 = vmatpush1.bf16.msra.mxu0 %v3419_v16  ;;  %2766 = vmatpush1.bf16.msra.mxu1 %v3419_v16  ;;  %v132_v22 = vsub.f32 %v3411_v11, %v131_v18  ;;  %v149_v24 = vand.u32 4294901760, %v3421_v17  ;;  %v2773_v27 = vpack.c.bf16 %v3421_v17, %v3413_v13  ;;  %v608_v45 = vand.u32 4294901760, %v551_v41  ;;  %v559_v63 = vld [vmem:[%s4870_s3 + $0x50] sm:$0xff]  ;;  %v24_v8 = vld [vmem:[%s4867_s0] sm:$0xff]  ;;  %s3340_s11 = smov 98   ;;  %s3341_s12 = smov 18  }
   0x9   :  { %v138_v23 = vsub.f32 %v3413_v13, %v137_v19  ;;  %v144_v25 = vsub.f32 %v3417_v15, %v143_v20  ;;  %v2779_v26 = vpack.c.bf16 %v143_v20, %v131_v18  ;;  %v610_v46 = vand.u32 4294901760, %v554_v43  ;;  %s3342_s13 = smov 12   ;;  %s3343_s14 = smov 24  }
   0xa   :  { %v133_v28 = vand.u32 4294901760, %v132_v22  ;;  %v150_v30 = vsub.f32 %v3421_v17, %v149_v24  ;;  %v2781_v31 = vpack.c.bf16 %v149_v24, %v137_v19  ;;  %v3470_v49 = vsub.f32 %v3442_v36, %v602_v39  ;;  %v562_v17 = vld [vmem:[%s4870_s3 + $0x68] sm:$0xff]  ;;  %s3344_s15 = smov 30   ;;  %s3345_s16 = smov 36  }
   0xb   :  { %v139_v29 = vand.u32 4294901760, %v138_v23  ;;  %v145_v32 = vand.u32 4294901760, %v144_v25  ;;  %2780 = vmatprep.subr.bf16.mxu0 %v2779_v26  ;;  %v3472_v50 = vsub.f32 %v552_v37, %v606_v40  ;;  %v3475_v51 = vsub.f32 %v3450_v38, %v604_v42  ;;  %v566_v38 = vld [vmem:[%s4870_s3 + $0x88] sm:$0xff]  ;;  %s3346_s17 = smov 42   ;;  %s3349_s18 = smov 86  }
   0xc   :  { %v151_v33 = vand.u32 4294901760, %v150_v30  ;;  %v614_v52 = vand.u32 4294901760, %v556_v44  ;;  %v3477_v53 = vsub.f32 %v551_v41, %v608_v45  ;;  %v3479_v54 = vsub.f32 %v554_v43, %v610_v46  ;;  %v563_v30 = vld [vmem:[%s4870_s3 + $0x70] sm:$0xff]  ;;  %v565_v43 = vld [vmem:[%s4870_s3 + $0x80] sm:$0xff]  ;;  %s3350_s19 = smov 92   ;;  %s3351_s20 = smov 80  }
   0xd   :  { %v2767_v34 = vpack.c.bf16 %v145_v32, %v133_v28  ;;  %v612_v56 = vand.u32 4294901760, %v553_v47  ;;  %v616_v57 = vand.u32 4294901760, %v555_v48  ;;  %v618_v60 = vand.u32 4294901760, %v558_v58  ;;  %s3352_s21 = smov 62   ;;  %s3353_s22 = smov 74  }
   0xe   :  { %v2769_v35 = vpack.c.bf16 %v151_v33, %v139_v29  ;;  %v3481_v55 = vsub.f32 %v556_v44, %v614_v52  ;;  %v622_v61 = vand.u32 4294901760, %v560_v59  ;;  %v620_v2 = vand.u32 4294901760, %v557_v62  ;;  %v561_v29 = vld [vmem:[%s4870_s3 + $0x60] sm:$0xff]  ;;  %v567_v44 = vld [vmem:[%s4870_s3 + $0x90] sm:$0xff]  ;;  %s3354_s24 = smov 56   ;;  %s3355_s25 = smov 50  }
   0xf   :  { %2768 = vmatprep.subr.bf16.mxu1 %v2767_v34  ;;  %v3495_v0 = vsub.f32 %v553_v47, %v612_v56  ;;  %v3497_v1 = vsub.f32 %v555_v48, %v616_v57  ;;  %v3499_v3 = vsub.f32 %v558_v58, %v618_v60  ;;  %v624_v5 = vand.u32 4294901760, %v559_v63 }
  0x10   :  { %v3501_v4 = vsub.f32 %v560_v59, %v622_v61  ;;  %v3503_v6 = vsub.f32 %v557_v62, %v620_v2  ;;  %vm30_vm1 = vcmask 48128   ;;  %vm32_vm2 = vcmask 97280   ;;  %v569_v59 = vld [vmem:[%s4870_s3 + $0xa0] sm:$0xff] }
  0x11   :  { %v3505_v7 = vsub.f32 %v559_v63, %v624_v5  ;;  %vm38_vm3 = vcmask 105472   ;;  %v3520_v26 = vpack.c.bf16 %v606_v40, %v602_v39  ;;  %v3529_v11 = vpack.c.bf16 %v614_v52, %v610_v46  ;;  %v568_v39 = vld [vmem:[%s4870_s3 + $0x98] sm:$0xff]  ;;  %v570_v52 = vld [vmem:[%s4870_s3 + $0xa8] sm:$0xff] }
  0x12   :  { %v3532_v15 = vpack.c.bf16 %v616_v57, %v612_v56  ;;  %v3538_v13 = vpack.c.bf16 %v624_v5, %v620_v2  ;;  %v632_v32 = vand.u32 4294901760, %v563_v30  ;;  %v634_v41 = vand.u32 4294901760, %v566_v38  ;;  %v572_v56 = vld [vmem:[%s4870_s3 + $0xb8] sm:$0xff]  ;;  %v574_v5 = vld [vmem:[%s4870_s3 + $0xc8] sm:$0xff] }
  0x13   :  { %5016 = vst [vmem:[#allocation8_spill] sm:$0xff] %v3520_v26  ;;  %5018 = vst [vmem:[#allocation10_spill] sm:$0xff] %v3529_v11  ;;  %v640_v46 = vand.u32 4294901760, %v567_v44  ;;  %v642_v57 = vand.u32 4294901760, %v570_v52  ;;  %v646_v58 = vand.u32 4294901760, %v572_v56  ;;  %vm595_vm4 = vcmask 1046528  }
  0x14   :  { %5019 = vst [vmem:[#allocation11_spill] sm:$0xff] %v3532_v15  ;;  %5021 = vst [vmem:[#allocation13_spill] sm:$0xff] %v3538_v13  ;;  %v3571_v40 = vsub.f32 %v563_v30, %v632_v32  ;;  %vm545_vm5 = vcmask 261120   ;;  %vm547_vm6 = vcmask 310272   ;;  %vm591_vm7 = vcmask 318464  }
  0x15   :  { %v3598_v63 = vpack.c.bf16 %v646_v58, %v642_v57  ;;  %vm2382_vm8 = vcmask 146432   ;;  %vm2384_vm9 = vcmask 195584   ;;  %vm2413_vm10 = vcmask 244736  }
  0x16   :  { %5024 = vst [vmem:[#allocation16_spill] sm:$0xff] %v3571_v40  ;;  %vm2415_vm11 = vcmask 490496  }
  0x17   :  { %5027 = vst [vmem:[#allocation19_spill] sm:$0xff] %v3598_v63 }
  0x74   :  { %v28_v9 = vpop.permute.xlu0 %27 }
  0x75   :  { %v31_v12 = vsel %vm30_vm1, %v24_v8, %v28_v9  ;;  %v576_v8 = vld [vmem:[%s4870_s3 + $0xd8] sm:$0xff]  ;;  %v650_v9 = vand.u32 4294901760, %v574_v5 }
  0x76   :  { %v33_v18 = vsel %vm32_vm2, %v31_v12, 1.0  ;;  %v654_v12 = vand.u32 4294901760, %v576_v8 }
  0x77   :  { %v40_v19 = vsel %vm38_vm3, %v33_v18, 0  ;;  %v573_v18 = vld [vmem:[%s4870_s3 + $0xc0] sm:$0xff] }
  0x78   :  { %v118_v20 = vand.u32 4294901760, %v40_v19 }
  0x7a   :  { %v119_v22 = vsub.f32 %v40_v19, %v118_v20  ;;  %v575_v19 = vld [vmem:[%s4870_s3 + $0xd0] sm:$0xff] }
  0x7c   :  { %v120_v23 = vand.u32 4294901760, %v119_v22 }
  0x7e   :  { %374 = vmatmul.mubr.f32.vlgmr.msra.gmra.mrb[0].mxu0 %v120_v23  ;;  %v121_v24 = vsub.f32 %v119_v22, %v120_v23  ;;  %v3616_v23 = vpack.c.bf16 %v654_v12, %v650_v9 }
  0x7f   :  { %2782 = vmatpush1.bf16.msra.mxu0 %v2781_v31  ;;  %456 = vmatprep.mubr.f32.mxu0 %v4874_v10  ;;  %v628_v31 = vand.u32 4294901760, %v561_v29 }
  0x80   :  { %v122_v25 = vand.u32 4294901760, %v121_v24  ;;  %2784 = vmatprep.subr.bf16.mxu0 %v3415_v14  ;;  %v3527_v14 = vpack.c.bf16 %v608_v45, %v604_v42  ;;  %v638_v42 = vand.u32 4294901760, %v568_v39  ;;  %v636_v45 = vand.u32 4294901760, %v565_v43  ;;  %5029 = vst [vmem:[#allocation21_spill] sm:$0xff] %v3616_v23 }
  0x81   :  { %v3560_v36 = vpack.c.bf16 %v632_v32, %v628_v31  ;;  %v3562_v37 = vsub.f32 %v561_v29, %v628_v31  ;;  %v579_v29 = vld [vmem:[%s4870_s3 + $0xf0] sm:$0xff] }
  0x82   :  { %123 = vmatmul.mubr.f32.vlgmr.msra.gmra.mrb[0].mxu1 %v122_v25  ;;  %5017 = vst [vmem:[#allocation9_spill] sm:$0xff] %v3527_v14  ;;  %v3580_v47 = vpack.c.bf16 %v638_v42, %v634_v41  ;;  %v3582_v48 = vpack.c.bf16 %v640_v46, %v636_v45  ;;  %v578_v25 = vld [vmem:[%s4870_s3 + $0xe8] sm:$0xff]  ;;  %v664_v31 = vand.u32 4294901760, %v579_v29 }
  0x83   :  { %2770 = vmatpush1.bf16.msra.mxu1 %v2769_v35  ;;  %213 = vmatprep.mubr.f32.mxu1 %v4874_v10  ;;  %5023 = vst [vmem:[#allocation15_spill] sm:$0xff] %v3560_v36 }
  0x84   :  { %2772 = vmatprep.subr.bf16.mxu1 %v2771_v21  ;;  %v564_v21 = vld [vmem:[%s4870_s3 + $0x78] sm:$0xff]  ;;  %5025 = vst [vmem:[#allocation17_spill] sm:$0xff] %v3580_v47  ;;  %5026 = vst [vmem:[#allocation18_spill] sm:$0xff] %v3582_v48 }
  0x85   :  { %v630_v28 = vand.u32 4294901760, %v564_v21 }
  0x86   :  { %458 = vmatmul.mubr.f32.vlgmr.msra.gmra.mrb[0].mxu0 %v118_v20 }
  0x87   :  { %2786 = vmatpush1.bf16.msra.mxu0 %v3419_v16  ;;  %532 = vmatprep.mubr.f32.mxu0 %v4874_v10  ;;  %v3535_v16 = vpack.c.bf16 %v622_v61, %v618_v60  ;;  %v3558_v35 = vsub.f32 %v564_v21, %v630_v28  ;;  %v571_v60 = vld [vmem:[%s4870_s3 + $0xb0] sm:$0xff]  ;;  %v644_v61 = vand.u32 4294901760, %v569_v59  ;;  %v658_v21 = vand.u32 4294901760, %v578_v25 }
  0x88   :  { %v648_v62 = vand.u32 4294901760, %v571_v60 }
  0x89   :  { %5020 = vst [vmem:[#allocation12_spill] sm:$0xff] %v3535_v16 }
  0x8a   :  { %215 = vmatmul.mubr.f32.vlgmr.msra.gmra.mrb[0].mxu1 %v118_v20  ;;  %v3600_v2 = vpack.c.bf16 %v648_v62, %v644_v61  ;;  %v3666_v40 = vsub.f32 %v571_v60, %v648_v62  ;;  %v3698_v60 = vsub.f32 %v579_v29, %v664_v31 }
  0x8b   :  { %2774 = vmatpush1.bf16.msra.mxu1 %v2773_v27  ;;  %293 = vmatprep.mubr.f32.mxu1 %v4874_v10  ;;  %v626_v27 = vand.u32 4294901760, %v562_v17 }
  0x8c   :  { %2788 = vmatprep.subr.bf16.mxu1 %v3520_v26  ;;  %5028 = vst [vmem:[#allocation20_spill] sm:$0xff] %v3600_v2  ;;  %v3664_v26 = vsub.f32 %v569_v59, %v644_v61 }
  0x8d   :  { %v3554_v33 = vpack.c.bf16 %v630_v28, %v626_v27  ;;  %v3556_v34 = vsub.f32 %v562_v17, %v626_v27  ;;  %v580_v17 = vld [vmem:[%s4870_s3 + $0xf8] sm:$0xff]  ;;  %v577_v28 = vld [vmem:[%s4870_s3 + $0xe0] sm:$0xff] }
  0x8e   :  { %534 = vmatmul.mubr.f32.vlgmr.msra.gmra.mrb[0].mxu0 %v118_v20  ;;  %v652_v20 = vand.u32 4294901760, %v573_v18  ;;  %v662_v27 = vand.u32 4294901760, %v580_v17  ;;  %v660_v30 = vand.u32 4294901760, %v577_v28 }
  0x8f   :  { %5022 = vst [vmem:[#allocation14_spill] sm:$0xff] %v3554_v33 }
  0x90   :  { %v3634_v32 = vpack.c.bf16 %v662_v27, %v658_v21  ;;  %v3636_v10 = vpack.c.bf16 %v664_v31, %v660_v30  ;;  %v3696_v59 = vsub.f32 %v577_v28, %v660_v30  ;;  %v4910_v31 = vand.u32 4294901760, %v3477_v53 }
  0x92   :  { %296 = vmatmul.mubr.f32.vlgmr.msra.gmra.mrb[0].mxu1 %v119_v22  ;;  %v656_v22 = vand.u32 4294901760, %v575_v19  ;;  %5031 = vst [vmem:[#allocation23_spill] sm:$0xff] %v3634_v32  ;;  %5032 = vst [vmem:[#allocation24_spill] sm:$0xff] %v3636_v10 }
  0x93   :  { %2790 = vmatpush1.bf16.msra.mxu1 %v3527_v14  ;;  %v3662_v14 = vsub.f32 %v572_v56, %v646_v58  ;;  %v587_v56 = vld [vmem:[%s4870_s3 + $0x130] sm:$0xff]  ;;  %v3694_v58 = vsub.f32 %v580_v17, %v662_v27 }
  0x94   :  { %2792 = vmatprep.subr.bf16.mxu1 %v3529_v11  ;;  %v3618_v24 = vpack.c.bf16 %v656_v22, %v652_v20  ;;  %v3660_v11 = vsub.f32 %v570_v52, %v642_v57  ;;  %v585_v52 = vld [vmem:[%s4870_s3 + $0x120] sm:$0xff]  ;;  %v3692_v57 = vsub.f32 %v578_v25, %v658_v21 }
  0x96   :  { %5030 = vst [vmem:[#allocation22_spill] sm:$0xff] %v3618_v24 }
  0x97   :  { %2794 = vmatpush1.bf16.msra.mxu1 %v3532_v15  ;;  %v3656_v15 = vsub.f32 %v565_v43, %v636_v45  ;;  %v588_v45 = vld [vmem:[%s4870_s3 + $0x138] sm:$0xff] }
  0x98   :  { %2796 = vmatprep.subr.bf16.mxu1 %v3535_v16  ;;  %v3654_v16 = vsub.f32 %v568_v39, %v638_v42  ;;  %v3673_v39 = vsub.f32 %v576_v8, %v654_v12  ;;  %v3677_v42 = vsub.f32 %v575_v19, %v656_v22  ;;  %v678_v12 = vand.u32 4294901760, %v588_v45 }
  0x99   :  { %v676_v19 = vand.u32 4294901760, %v585_v52 }
  0x9b   :  { %2798 = vmatpush1.bf16.msra.mxu1 %v3538_v13  ;;  %v3652_v13 = vsub.f32 %v566_v38, %v634_v41  ;;  %v3671_v38 = vsub.f32 %v574_v5, %v650_v9  ;;  %v3675_v41 = vsub.f32 %v573_v18, %v652_v20  ;;  %v590_v9 = vld [vmem:[%s4870_s3 + $0x148] sm:$0x7f]  ;;  %v680_v20 = vand.u32 4294901760, %v587_v56 }
  0x9c   :  { %2800 = vmatprep.subr.bf16.mxu1 %v3554_v33 }
  0x9d   :  { %v3725_v22 = vpack.c.bf16 %v680_v20, %v676_v19 }
  0x9f   :  { %2802 = vmatpush1.bf16.msra.mxu1 %v3560_v36  ;;  %5039 = vst [vmem:[#allocation31_spill] sm:$0xff] %v3725_v22 }
  0xa0   :  { %2804 = vmatprep.subr.bf16.mxu1 %v3580_v47 }
  0xa3   :  { %2806 = vmatpush1.bf16.msra.mxu1 %v3582_v48 }
  0xa4   :  { %2808 = vmatprep.subr.bf16.mxu1 %v3598_v63  ;;  %v583_v63 = vld [vmem:[%s4870_s3 + $0x110] sm:$0xff] }
  0xa5   :  { %v672_v33 = vand.u32 4294901760, %v583_v63 }
  0xa7   :  { %2810 = vmatpush1.bf16.msra.mxu1 %v3600_v2  ;;  %v584_v2 = vld [vmem:[%s4870_s3 + $0x118] sm:$0xff]  ;;  %v3707_v8 = vsub.f32 %v583_v63, %v672_v33 }
  0xa8   :  { %2812 = vmatprep.subr.bf16.mxu1 %v3616_v23  ;;  %v582_v23 = vld [vmem:[%s4870_s3 + $0x108] sm:$0xff]  ;;  %v670_v47 = vand.u32 4294901760, %v584_v2 }
  0xa9   :  { %v666_v48 = vand.u32 4294901760, %v582_v23  ;;  %5035 = vst [vmem:[#allocation27_spill] sm:$0xff] %v3707_v8 }
  0xaa   :  { %v3703_v62 = vsub.f32 %v584_v2, %v670_v47  ;;  %v3723_v2 = vsub.f32 %v588_v45, %v678_v12  ;;  %v4912_v45 = vand.u32 4294901760, %v3479_v54 }
  0xab   :  { %2814 = vmatpush1.bf16.msra.mxu1 %v3618_v24  ;;  %v581_v24 = vld [vmem:[%s4870_s3 + $0x100] sm:$0xff]  ;;  %v3679_v43 = vpack.c.bf16 %v670_v47, %v666_v48  ;;  %v3701_v61 = vsub.f32 %v582_v23, %v666_v48  ;;  %v4909_v48 = vand.u32 4294901760, %v3475_v51  ;;  %v3729_v23 = vsub.f32 %v587_v56, %v680_v20 }
  0xac   :  { %2816 = vmatprep.subr.bf16.mxu1 %v3634_v32  ;;  %v668_v36 = vand.u32 4294901760, %v581_v24  ;;  %v3658_v32 = vsub.f32 %v567_v44, %v640_v46  ;;  %v589_v47 = vld [vmem:[%s4870_s3 + $0x140] sm:$0x7f]  ;;  %5038 = vst [vmem:[#allocation30_spill] sm:$0xff] %v3723_v2 }
  0xad   :  { %5033 = vst [vmem:[#allocation25_spill] sm:$0xff] %v3679_v43  ;;  %5041 = vst [vmem:[#allocation33_spill] sm:$0xff] %v3729_v23  ;;  %v3735_v25 = vsel %vm595_vm4, %v589_v47, 0  ;;  %v734_v29 = vsub.f32 %v3475_v51, %v4909_v48  ;;  %v4918_v47 = vand.u32 4294901760, %v3497_v1  ;;  %v4923_v48 = vand.u32 4294901760, %v3501_v4 }
  0xae   :  { %v3681_v44 = vpack.c.bf16 %v672_v33, %v668_v36  ;;  %v3705_v5 = vsub.f32 %v581_v24, %v668_v36  ;;  %v4914_v36 = vand.u32 4294901760, %v3470_v49  ;;  %v4911_v33 = vand.u32 4294901760, %v3472_v50  ;;  %5043 = vst [vmem:[#allocation35_spill] sm:$0xff] %v3735_v25 }
  0xaf   :  { %2818 = vmatpush1.bf16.msra.mxu1 %v3636_v10  ;;  %v586_v10 = vld [vmem:[%s4870_s3 + $0x128] sm:$0xff]  ;;  %v3732_v24 = vsel %vm595_vm4, %v590_v9, 0  ;;  %v3745_v27 = vand.u32 4294901760, %v3735_v25  ;;  %v735_v56 = vand.u32 4294901760, %v734_v29  ;;  %v4915_v9 = vand.u32 4294901760, %v3495_v0  ;;  %s3347_s3 = smov 48  }
  0xb0   :  { %5034 = vst [vmem:[#allocation26_spill] sm:$0xff] %v3681_v44  ;;  %v674_v46 = vand.u32 4294901760, %v586_v10  ;;  %2820 = vmatprep.subr.bf16.mxu1 %v3679_v43  ;;  %5042 = vst [vmem:[#allocation34_spill] sm:$0xff] %v3732_v24  ;;  %v728_v17 = vsub.f32 %v3470_v49, %v4914_v36  ;;  %v3742_v21 = vand.u32 4294901760, %v3732_v24  ;;  %v740_v28 = vsub.f32 %v3472_v50, %v4911_v33 }
  0xb1   :  { %5045 = vst [vmem:[#allocation37_spill] sm:$0xff] %v3745_v27  ;;  %v4919_v29 = vand.u32 4294901760, %v3499_v3  ;;  %v4939_v25 = vand.u32 4294901760, %v3658_v32 }
  0xb2   :  { %v3713_v18 = vsub.f32 %v586_v10, %v674_v46  ;;  %v3721_v63 = vpack.c.bf16 %v678_v12, %v674_v46  ;;  %v3727_v10 = vsub.f32 %v585_v52, %v676_v19  ;;  %5044 = vst [vmem:[#allocation36_spill] sm:$0xff] %v3742_v21  ;;  %v729_v30 = vand.u32 4294901760, %v728_v17 }
  0xb3   :  { %2822 = vmatpush1.bf16.msra.mxu1 %v3681_v44  ;;  %v4913_v46 = vand.u32 4294901760, %v3481_v55  ;;  %v741_v52 = vand.u32 4294901760, %v740_v28  ;;  %v746_v12 = vsub.f32 %v3477_v53, %v4910_v31  ;;  %v752_v19 = vsub.f32 %v3479_v54, %v4912_v45 }
  0xb4   :  { %5036 = vst [vmem:[#allocation28_spill] sm:$0xff] %v3713_v18  ;;  %5037 = vst [vmem:[#allocation29_spill] sm:$0xff] %v3721_v63  ;;  %2824 = vmatprep.subr.bf16.mxu1 %v3721_v63  ;;  %v758_v28 = vsub.f32 %v3495_v0, %v4915_v9  ;;  %v4922_v9 = vand.u32 4294901760, %v3503_v6 }
  0xb5   :  { %5040 = vst [vmem:[#allocation32_spill] sm:$0xff] %v3727_v10  ;;  %v764_v20 = vsub.f32 %v3481_v55, %v4913_v46  ;;  %v2827_v17 = vpack.c.bf16 %v741_v52, %v729_v30  ;;  %v747_v31 = vand.u32 4294901760, %v746_v12  ;;  %v753_v33 = vand.u32 4294901760, %v752_v19 }
  0xb6   :  { %v770_v46 = vsub.f32 %v3497_v1, %v4918_v47  ;;  %v759_v36 = vand.u32 4294901760, %v758_v28  ;;  %v776_v30 = vsub.f32 %v3499_v3, %v4919_v29  ;;  %v788_v52 = vsub.f32 %v3501_v4, %v4923_v48 }
  0xb7   :  { %2826 = vmatpush1.bf16.msra.mxu1 %v3725_v22  ;;  %v765_v45 = vand.u32 4294901760, %v764_v20  ;;  %v3785_v22 = vpack.c.bf16 %v747_v31, %v735_v56  ;;  %v4924_v20 = vand.u32 4294901760, %v3505_v7  ;;  %v782_v28 = vsub.f32 %v3503_v6, %v4922_v9 }
  0xb8   :  { %683 = vmatprep.subr.mxu1 %v3742_v21  ;;  %v771_v19 = vand.u32 4294901760, %v770_v46  ;;  %v777_v47 = vand.u32 4294901760, %v776_v30  ;;  %v4925_v29 = vand.u32 4294901760, %v3556_v34  ;;  %v4948_v21 = vand.u32 4294901760, %v3673_v39 }
  0xb9   :  { %v3787_v12 = vpack.c.bf16 %v765_v45, %v753_v33  ;;  %v794_v31 = vsub.f32 %v3505_v7, %v4924_v20  ;;  %v4930_v33 = vand.u32 4294901760, %v3558_v35  ;;  %v4931_v45 = vand.u32 4294901760, %v3562_v37 }
  0xba   :  { %v3794_v63 = vpack.c.bf16 %v771_v19, %v759_v36  ;;  %v783_v56 = vand.u32 4294901760, %v782_v28  ;;  %v800_v30 = vsub.f32 %v3556_v34, %v4925_v29  ;;  %v4936_v20 = vand.u32 4294901760, %v3652_v13 }
  0xbb   :  { %685 = vmatpush1.msra.mxu1 %v3745_v27  ;;  %v795_v48 = vand.u32 4294901760, %v794_v31  ;;  %v812_v36 = vsub.f32 %v3558_v35, %v4930_v33  ;;  %v806_v19 = vsub.f32 %v3562_v37, %v4931_v45  ;;  %v4937_v28 = vand.u32 4294901760, %v3654_v16 }
  0xbc   :  { %2828 = vmatprep.subr.bf16.mxu1 %v2827_v17  ;;  %v789_v17 = vand.u32 4294901760, %v788_v52  ;;  %v5046_v52 = vld [vmem:[#allocation16_spill] sm:$0xff]  ;;  %v4938_v29 = vand.u32 4294901760, %v3656_v15  ;;  %v824_v33 = vsub.f32 %v3652_v13, %v4936_v20 }
  0xbd   :  { %v4932_v9 = vand.u32 4294901760, %v5046_v52  ;;  %v3819_v31 = vpack.c.bf16 %v795_v48, %v783_v56  ;;  %v813_v44 = vand.u32 4294901760, %v812_v36  ;;  %v807_v43 = vand.u32 4294901760, %v806_v19 }
  0xbe   :  { %v3801_v46 = vpack.c.bf16 %v789_v17, %v777_v47  ;;  %v801_v47 = vand.u32 4294901760, %v800_v30  ;;  %v836_v30 = vsub.f32 %v3654_v16, %v4937_v28  ;;  %v825_v48 = vand.u32 4294901760, %v824_v33 }
  0xbf   :  { %v818_v17 = vsub.f32 %v5046_v52, %v4932_v9  ;;  %v830_v9 = vsub.f32 %v3656_v15, %v4938_v29  ;;  %v4940_v56 = vand.u32 4294901760, %v3660_v11  ;;  %v4942_v36 = vand.u32 4294901760, %v3662_v14 }
  0xc0   :  { %v3831_v27 = vpack.c.bf16 %v813_v44, %v801_v47  ;;  %v842_v28 = vsub.f32 %v3658_v32, %v4939_v25  ;;  %v4945_v33 = vand.u32 4294901760, %v3664_v26  ;;  %v4946_v47 = vand.u32 4294901760, %v3666_v40 }
  0xc1   :  { %v819_v45 = vand.u32 4294901760, %v818_v17  ;;  %v837_v17 = vand.u32 4294901760, %v836_v30  ;;  %v831_v20 = vand.u32 4294901760, %v830_v9  ;;  %v848_v29 = vsub.f32 %v3660_v11, %v4940_v56 }
  0xc2   :  { %v860_v44 = vsub.f32 %v3662_v14, %v4942_v36  ;;  %v854_v25 = vsub.f32 %v3664_v26, %v4945_v33  ;;  %v866_v56 = vsub.f32 %v3666_v40, %v4946_v47  ;;  %v4947_v36 = vand.u32 4294901760, %v3671_v38 }
  0xc3   :  { %v3835_v19 = vpack.c.bf16 %v819_v45, %v807_v43  ;;  %v3848_v43 = vpack.c.bf16 %v837_v17, %v825_v48  ;;  %v843_v45 = vand.u32 4294901760, %v842_v28  ;;  %v849_v9 = vand.u32 4294901760, %v848_v29 }
  0xc4   :  { %v861_v30 = vand.u32 4294901760, %v860_v44  ;;  %v4949_v48 = vand.u32 4294901760, %v3675_v41  ;;  %v855_v29 = vand.u32 4294901760, %v854_v25  ;;  %v867_v28 = vand.u32 4294901760, %v866_v56 }
  0xc5   :  { %5047 = vst [vmem:[#allocation16_spill] sm:$0xff] %v3835_v19  ;;  %5048 = vst [vmem:[#allocation38_spill] sm:$0xff] %v3848_v43  ;;  %v3856_v24 = vpack.c.bf16 %v843_v45, %v831_v20  ;;  %v4950_v44 = vand.u32 4294901760, %v3677_v42  ;;  %v872_v33 = vsub.f32 %v3671_v38, %v4947_v36  ;;  %v884_v20 = vsub.f32 %v3673_v39, %v4948_v21 }
  0xc6   :  { %v3861_v17 = vpack.c.bf16 %v861_v30, %v849_v9  ;;  %v878_v45 = vsub.f32 %v3675_v41, %v4949_v48  ;;  %v3873_v47 = vpack.c.bf16 %v867_v28, %v855_v29  ;;  %v4951_v56 = vand.u32 4294901760, %v3692_v57 }
  0xc7   :  { %5049 = vst [vmem:[#allocation39_spill] sm:$0xff] %v3856_v24  ;;  %v890_v25 = vsub.f32 %v3677_v42, %v4950_v44  ;;  %v4952_v9 = vand.u32 4294901760, %v3694_v58  ;;  %v873_v30 = vand.u32 4294901760, %v872_v33  ;;  %v885_v36 = vand.u32 4294901760, %v884_v20 }
  0xc8   :  { %5050 = vst [vmem:[#allocation40_spill] sm:$0xff] %v3861_v17  ;;  %5051 = vst [vmem:[#allocation41_spill] sm:$0xff] %v3873_v47  ;;  %v879_v17 = vand.u32 4294901760, %v878_v45  ;;  %v4953_v24 = vand.u32 4294901760, %v3696_v59  ;;  %v896_v48 = vsub.f32 %v3692_v57, %v4951_v56  ;;  %v4955_v28 = vand.u32 4294901760, %v3698_v60 }
  0xc9   :  { %v891_v21 = vand.u32 4294901760, %v890_v25  ;;  %v908_v29 = vsub.f32 %v3694_v58, %v4952_v9  ;;  %v3888_v44 = vpack.c.bf16 %v885_v36, %v873_v30  ;;  %v4954_v43 = vand.u32 4294901760, %v3701_v61 }
  0xca   :  { %v902_v33 = vsub.f32 %v3696_v59, %v4953_v24  ;;  %v897_v45 = vand.u32 4294901760, %v896_v48  ;;  %v914_v56 = vsub.f32 %v3698_v60, %v4955_v28  ;;  %v4956_v9 = vand.u32 4294901760, %v3703_v62 }
  0xcb   :  { %5052 = vst [vmem:[#allocation42_spill] sm:$0xff] %v3888_v44  ;;  %v3893_v20 = vpack.c.bf16 %v891_v21, %v879_v17  ;;  %v909_v25 = vand.u32 4294901760, %v908_v29  ;;  %v4957_v36 = vand.u32 4294901760, %v3705_v5  ;;  %v4958_v24 = vand.u32 4294901760, %v3707_v8 }
  0xcc   :  { %v903_v47 = vand.u32 4294901760, %v902_v33  ;;  %v915_v44 = vand.u32 4294901760, %v914_v56  ;;  %v920_v21 = vsub.f32 %v3701_v61, %v4954_v43  ;;  %v932_v48 = vsub.f32 %v3703_v62, %v4956_v9 }
  0xcd   :  { %5053 = vst [vmem:[#allocation43_spill] sm:$0xff] %v3893_v20  ;;  %v3901_v30 = vpack.c.bf16 %v909_v25, %v897_v45  ;;  %v926_v17 = vsub.f32 %v3705_v5, %v4957_v36  ;;  %v938_v56 = vsub.f32 %v3707_v8, %v4958_v24  ;;  %v4959_v33 = vand.u32 4294901760, %v3713_v18 }
  0xce   :  { %v3913_v29 = vpack.c.bf16 %v915_v44, %v903_v47  ;;  %v4960_v45 = vand.u32 4294901760, %v3723_v2  ;;  %v921_v25 = vand.u32 4294901760, %v920_v21  ;;  %v933_v43 = vand.u32 4294901760, %v932_v48 }
  0xcf   :  { %5054 = vst [vmem:[#allocation44_spill] sm:$0xff] %v3901_v30  ;;  %v927_v28 = vand.u32 4294901760, %v926_v17  ;;  %v4962_v30 = vand.u32 4294901760, %v3727_v10  ;;  %v939_v9 = vand.u32 4294901760, %v938_v56  ;;  %v944_v36 = vsub.f32 %v3713_v18, %v4959_v33 }
  0xd0   :  { %5055 = vst [vmem:[#allocation45_spill] sm:$0xff] %v3913_v29  ;;  %v956_v47 = vsub.f32 %v3723_v2, %v4960_v45  ;;  %v4961_v44 = vand.u32 4294901760, %v3729_v23  ;;  %v3928_v24 = vpack.c.bf16 %v933_v43, %v921_v25  ;;  %v2867_v43 = vpack.c.bf16 %v3472_v50, %v3470_v49 }
  0xd1   :  { %v950_v21 = vsub.f32 %v3727_v10, %v4962_v30  ;;  %v3933_v48 = vpack.c.bf16 %v939_v9, %v927_v28  ;;  %v945_v17 = vand.u32 4294901760, %v944_v36 }
  0xd2   :  { %v957_v56 = vand.u32 4294901760, %v956_v47  ;;  %v962_v33 = vsub.f32 %v3729_v23, %v4961_v44  ;;  %v3982_v47 = vpop.permute.xlu0 %542 }
  0xd3   :  { %v951_v29 = vand.u32 4294901760, %v950_v21  ;;  %5056 = vst [vmem:[#allocation46_spill] sm:$0xff] %v3982_v47 }
  0xd4   :  { %v3938_v20 = vpack.c.bf16 %v957_v56, %v945_v17  ;;  %v963_v45 = vand.u32 4294901760, %v962_v33 }
  0xd6   :  { %v3940_v19 = vpack.c.bf16 %v963_v45, %v951_v29 }
 0x161   :  { %v535_v29 = vpop.f32.mrb[0].mxu0 }
 0x162   :  { %v537_v30 = vpop.f32.mrb[1].mxu0 }
 0x165   :  { %v297_v33 = vpop.f32.mrb[0].mxu1 }
 0x166   :  { %v3207_v36 = vadd.f32 %v535_v29, %v297_v33  ;;  %v299_v45 = vpop.f32.mrb[1].mxu1 }
 0x167   :  { %v3208_v28 = vadd.f32 %v537_v30, %v299_v45 }
 0x168   :  { %3263 = vtanh.f32 %v3207_v36 }
 0x169   :  { %3265 = vtanh.f32 %v3208_v28 }
 0x172   :  { %v3264_v21 = vpop.eup %3263 }
 0x173   :  { %v3266_v17 = vpop.eup %3265  ;;  %v3984_v9 = vand.u32 4294901760, %v3264_v21 }
 0x174   :  { %v546_v44 = vsel %vm545_vm5, %v3266_v17, %v3982_v47  ;;  %v5093_v47 = vld [vmem:[#allocation9_spill] sm:$0xff] }
 0x175   :  { %5057 = vst [vmem:[#allocation47_spill] sm:$0xff] %v3984_v9  ;;  %v3989_v56 = vsub.f32 %v3264_v21, %v3984_v9  ;;  %v548_v33 = vsel %vm547_vm6, %v546_v44, 1.0 }
 0x176   :  { %v593_v30 = vsel %vm591_vm7, %v548_v33, 0  ;;  %v5058_v33 = vld [vmem:[#allocation16_spill] sm:$0xff] }
 0x177   :  { %v3993_v28 = vand.u32 4294901760, %v593_v30  ;;  %v4963_v36 = vand.u32 4294901760, %v3989_v56 }
 0x179   :  { %v3997_v29 = vsub.f32 %v593_v30, %v3993_v28  ;;  %v717_v17 = vsub.f32 %v3989_v56, %v4963_v36  ;;  %v5059_v30 = vld [vmem:[#allocation38_spill] sm:$0xff] }
 0x17b   :  { %v4968_v45 = vand.u32 4294901760, %v3997_v29  ;;  %v718_v25 = vand.u32 4294901760, %v717_v17  ;;  %v5060_v17 = vld [vmem:[#allocation39_spill] sm:$0xff] }
 0x17d   :  { %v711_v21 = vsub.f32 %v3997_v29, %v4968_v45  ;;  %v1611_v45 = vld [vmem:[%s4871_s4 + $0x38] sm:$0xff] }
 0x17f   :  { %v712_v44 = vand.u32 4294901760, %v711_v21  ;;  %v5063_v21 = vld [vmem:[#allocation42_spill] sm:$0xff] }
 0x181   :  { %713 = vmatprep.mubr.f32.mxu1 %v712_v44 }
 0x182   :  { %719 = vmatmul.mubr.f32.vlgmr.msra.gmra.mrb[2].mxu1 %v718_v25  ;;  %v5061_v25 = vld [vmem:[#allocation40_spill] sm:$0xff] }
 0x183   :  { %2830 = vmatpush1.bf16.msra.mxu1 %v3785_v22  ;;  %1000 = vmatprep.mubr.f32.mxu1 %v3993_v28  ;;  %v5062_v22 = vld [vmem:[#allocation41_spill] sm:$0xff] }
 0x184   :  { %2832 = vmatprep.subr.bf16.mxu1 %v3787_v12  ;;  %v5064_v12 = vld [vmem:[#allocation36_spill] sm:$0xff] }
 0x187   :  { %2834 = vmatpush1.bf16.msra.mxu1 %v3794_v63  ;;  %v5065_v63 = vld [vmem:[#allocation34_spill] sm:$0xff] }
 0x188   :  { %2836 = vmatprep.subr.bf16.mxu1 %v3801_v46  ;;  %v4021_v44 = vsub.f32 %v5065_v63, %v5064_v12  ;;  %v5067_v46 = vld [vmem:[#allocation37_spill] sm:$0xff] }
 0x18a   :  { %5066 = vst [vmem:[#allocation16_spill] sm:$0xff] %v4021_v44 }
 0x18b   :  { %2838 = vmatpush1.bf16.msra.mxu1 %v3819_v31  ;;  %v5068_v31 = vld [vmem:[#allocation35_spill] sm:$0xff] }
 0x18c   :  { %2840 = vmatprep.subr.bf16.mxu1 %v3831_v27  ;;  %v4025_v36 = vsub.f32 %v5068_v31, %v5067_v46  ;;  %v5070_v27 = vld [vmem:[#allocation43_spill] sm:$0xff] }
 0x18e   :  { %5069 = vst [vmem:[#allocation38_spill] sm:$0xff] %v4025_v36 }
 0x18f   :  { %2842 = vmatpush1.bf16.msra.mxu1 %v5058_v33  ;;  %v5071_v33 = vld [vmem:[#allocation44_spill] sm:$0xff] }
 0x190   :  { %2844 = vmatprep.subr.bf16.mxu1 %v5059_v30  ;;  %v4965_v30 = vand.u32 4294901760, %v4021_v44 }
 0x193   :  { %2846 = vmatpush1.bf16.msra.mxu1 %v5060_v17  ;;  %v5072_v17 = vld [vmem:[#allocation45_spill] sm:$0xff] }
 0x194   :  { %2848 = vmatprep.subr.bf16.mxu1 %v5061_v25  ;;  %v4964_v25 = vand.u32 4294901760, %v4025_v36 }
 0x197   :  { %2850 = vmatpush1.bf16.msra.mxu1 %v5062_v22  ;;  %v968_v22 = vsub.f32 %v4021_v44, %v4965_v30 }
 0x198   :  { %2852 = vmatprep.subr.bf16.mxu1 %v5063_v21  ;;  %v974_v21 = vsub.f32 %v4025_v36, %v4964_v25 }
 0x199   :  { %v969_v63 = vand.u32 4294901760, %v968_v22  ;;  %v5081_v22 = vpack.c.bf16 %v3658_v32, %v3656_v15 }
 0x19a   :  { %v975_v31 = vand.u32 4294901760, %v974_v21  ;;  %v5082_v21 = vpack.c.bf16 %v3662_v14, %v3660_v11 }
 0x19b   :  { %2854 = vmatpush1.bf16.msra.mxu1 %v5070_v27  ;;  %v5078_v27 = vpack.c.bf16 %v3558_v35, %v3556_v34 }
 0x19c   :  { %2856 = vmatprep.subr.bf16.mxu1 %v5071_v33  ;;  %v5079_v33 = vpack.c.bf16 %v5046_v52, %v3562_v37 }
 0x19f   :  { %2858 = vmatpush1.bf16.msra.mxu1 %v5072_v17  ;;  %v5080_v17 = vpack.c.bf16 %v3654_v16, %v3652_v13 }
 0x1a0   :  { %2860 = vmatprep.subr.bf16.mxu1 %v3928_v24  ;;  %v5073_v24 = vpack.c.bf16 %v3477_v53, %v3475_v51 }
 0x1a3   :  { %2862 = vmatpush1.bf16.msra.mxu1 %v3933_v48  ;;  %v5076_v48 = vpack.c.bf16 %v3501_v4, %v3499_v3 }
 0x1a4   :  { %2864 = vmatprep.subr.bf16.mxu1 %v3938_v20  ;;  %v5074_v20 = vpack.c.bf16 %v3481_v55, %v3479_v54 }
 0x1a7   :  { %2866 = vmatpush1.bf16.msra.mxu1 %v3940_v19  ;;  %v5075_v19 = vpack.c.bf16 %v3497_v1, %v3495_v0 }
 0x1a8   :  { %970 = vmatprep.subr.mxu1 %v969_v63  ;;  %v5083_v63 = vpack.c.bf16 %v3666_v40, %v3664_v26 }
 0x1ab   :  { %976 = vmatpush1.msra.mxu1 %v975_v31  ;;  %v5084_v31 = vpack.c.bf16 %v3673_v39, %v3671_v38 }
 0x1ac   :  { %1002 = vmatmul.mubr.f32.vlgmr.msra.gmra.mrb[2].mxu1 %v3984_v9  ;;  %2868 = vmatprep.subr.bf16.mxu1 %v2867_v43  ;;  %v5077_v43 = vpack.c.bf16 %v3505_v7, %v3503_v6  ;;  %v5094_v9 = vand.u32 4294901760, %v3997_v29 }
 0x1ad   :  { %2870 = vmatpush1.bf16.msra.mxu1 %v5073_v24  ;;  %1158 = vmatprep.mubr.f32.mxu1 %v3997_v29  ;;  %v5085_v24 = vpack.c.bf16 %v3677_v42, %v3675_v41  ;;  %v1653_v29 = vand.u32 4294901760, %v1611_v45 }
 0x1ae   :  { %2872 = vmatprep.subr.bf16.mxu1 %v5074_v20  ;;  %v5086_v20 = vpack.c.bf16 %v3694_v58, %v3692_v57 }
 0x1b1   :  { %2874 = vmatpush1.bf16.msra.mxu1 %v5075_v19  ;;  %v5087_v19 = vpack.c.bf16 %v3698_v60, %v3696_v59 }
 0x1b2   :  { %2876 = vmatprep.subr.bf16.mxu1 %v5076_v48  ;;  %v5088_v48 = vpack.c.bf16 %v3703_v62, %v3701_v61 }
 0x1b5   :  { %2878 = vmatpush1.bf16.msra.mxu1 %v5077_v43  ;;  %v5089_v43 = vpack.c.bf16 %v3707_v8, %v3705_v5 }
 0x1b6   :  { %2880 = vmatprep.subr.bf16.mxu1 %v5078_v27  ;;  %v5090_v27 = vpack.c.bf16 %v3723_v2, %v3713_v18 }
 0x1b9   :  { %2882 = vmatpush1.bf16.msra.mxu1 %v5079_v33  ;;  %v5091_v33 = vpack.c.bf16 %v3729_v23, %v3727_v10  ;;  %v5098_v10 = vld [vmem:[#allocation10_spill] sm:$0xff] }
 0x1ba   :  { %2884 = vmatprep.subr.bf16.mxu1 %v5080_v17  ;;  %v1604_v17 = vld [vmem:[%s4871_s4] sm:$0xff] }
 0x1bd   :  { %2886 = vmatpush1.bf16.msra.mxu1 %v5081_v22  ;;  %v1605_v22 = vld [vmem:[%s4871_s4 + $0x8] sm:$0xff] }
 0x1be   :  { %2888 = vmatprep.subr.bf16.mxu1 %v5082_v21  ;;  %v1606_v21 = vld [vmem:[%s4871_s4 + $0x10] sm:$0xff] }
 0x1c1   :  { %2890 = vmatpush1.bf16.msra.mxu1 %v5083_v63  ;;  %v4966_v63 = vmov 0.0|0.0  }
 0x1c2   :  { %2892 = vmatprep.subr.bf16.mxu1 %v5084_v31  ;;  %3027 = vmatprep.subr.bf16.mxu0 %v4966_v63  ;;  %v1632_v31 = vand.u32 4294901760, %v1604_v17  ;;  %v1610_v63 = vld [vmem:[%s4871_s4 + $0x30] sm:$0xff] }
 0x1c3   :  { %v1650_v23 = vand.u32 4294901760, %v1610_v63 }
 0x1c5   :  { %2894 = vmatpush1.bf16.msra.mxu1 %v5085_v24  ;;  %v1635_v24 = vand.u32 4294901760, %v1605_v22 }
 0x1c6   :  { %2896 = vmatprep.subr.bf16.mxu1 %v5086_v20  ;;  %v1607_v20 = vld [vmem:[%s4871_s4 + $0x18] sm:$0xff] }
 0x1c9   :  { %2898 = vmatpush1.bf16.msra.mxu1 %v5087_v19  ;;  %v1638_v19 = vand.u32 4294901760, %v1606_v21 }
 0x1ca   :  { %2900 = vmatprep.subr.bf16.mxu1 %v5088_v48  ;;  %v1608_v48 = vld [vmem:[%s4871_s4 + $0x20] sm:$0xff] }
 0x1cb   :  { %v1644_v25 = vand.u32 4294901760, %v1608_v48  ;;  %v4145_v18 = vsub.f32 %v1606_v21, %v1638_v19 }
 0x1cd   :  { %2902 = vmatpush1.bf16.msra.mxu1 %v5089_v43  ;;  %v1609_v43 = vld [vmem:[%s4871_s4 + $0x28] sm:$0xff]  ;;  %5100 = vst [vmem:[#allocation36_spill] sm:$0xff] %v4145_v18  ;;  %v5129_v18 = vand.u32 4294901760, %v3477_v53  ;;  %v5135_v53 = vand.u32 4294901760, %v3499_v3  ;;  %v5142_v3 = vand.u32 4294901760, %v5046_v52  ;;  %v5149_v52 = vand.u32 4294901760, %v3664_v26 }
 0x1ce   :  { %2904 = vmatprep.subr.bf16.mxu1 %v5090_v27  ;;  %v5092_v27 = vld [vmem:[#allocation8_spill] sm:$0xff]  ;;  %v1647_v30 = vand.u32 4294901760, %v1609_v43  ;;  %v5156_v26 = vand.u32 4294901760, %v3694_v58 }
 0x1cf   :  { %v5164_v58 = vld [vmem:[#allocation28_spill] sm:$0xff] }
 0x1d0   :  { %v4162_v21 = vpack.c.bf16 %v1647_v30, %v1644_v25 }
 0x1d1   :  { %2906 = vmatpush1.bf16.msra.mxu1 %v5091_v33  ;;  %v1641_v33 = vand.u32 4294901760, %v1607_v20 }
 0x1d2   :  { %1130 = vmatprep.subr.mxu1 %v4021_v44  ;;  %v4138_v44 = vsub.f32 %v1604_v17, %v1632_v31  ;;  %v4154_v17 = vsub.f32 %v1610_v63, %v1650_v23  ;;  %5109 = vst [vmem:[#allocation45_spill] sm:$0xff] %v4162_v21  ;;  %v4168_v63 = vpack.c.bf16 %v1653_v29, %v1650_v23  ;;  %v5119_v23 = vld [vmem:[#allocation22_spill] sm:$0xff] }
 0x1d3   :  { %v4143_v2 = vpack.c.bf16 %v1641_v33, %v1638_v19  ;;  %v4147_v8 = vsub.f32 %v1607_v20, %v1641_v33  ;;  %v5110_v20 = vld [vmem:[#allocation13_spill] sm:$0xff]  ;;  %v5111_v19 = vld [vmem:[#allocation14_spill] sm:$0xff] }
 0x1d4   :  { %5096 = vst [vmem:[#allocation40_spill] sm:$0xff] %v4138_v44  ;;  %5104 = vst [vmem:[#allocation43_spill] sm:$0xff] %v4154_v17  ;;  %v5118_v33 = vld [vmem:[#allocation21_spill] sm:$0xff]  ;;  %v5126_v17 = vand.u32 4294901760, %v3470_v49  ;;  %v5133_v49 = vand.u32 4294901760, %v3495_v0  ;;  %v5140_v0 = vand.u32 4294901760, %v3558_v35 }
 0x1d5   :  { %1133 = vmatpush1.msra.mxu1 %v4025_v36  ;;  %v4136_v36 = vpack.c.bf16 %v1635_v24, %v1632_v31  ;;  %5099 = vst [vmem:[#allocation42_spill] sm:$0xff] %v4143_v2  ;;  %5101 = vst [vmem:[#allocation34_spill] sm:$0xff] %v4147_v8  ;;  %v5106_v31 = vld [vmem:[#allocation11_spill] sm:$0xff]  ;;  %v5128_v8 = vand.u32 4294901760, %v3475_v51  ;;  %v5147_v35 = vand.u32 4294901760, %v3660_v11  ;;  %v5154_v11 = vand.u32 4294901760, %v3677_v42 }
 0x1d6   :  { %1161 = vmatmul.mubr.f32.vlgmr.msra.gmra.mrb[2].mxu1 %v3989_v56  ;;  %2908 = vmatprep.subr.bf16.mxu1 %v5092_v27  ;;  %v4140_v27 = vsub.f32 %v1605_v22, %v1635_v24  ;;  %v5105_v22 = vmov 0.0|0.0   ;;  %v4158_v24 = vsub.f32 %v1611_v45, %v1653_v29  ;;  %5112 = vst [vmem:[#allocation10_spill] sm:$0xff] %v4168_v63  ;;  %v5113_v45 = vld [vmem:[#allocation15_spill] sm:$0xff]  ;;  %v5161_v42 = vand.u32 4294901760, %v3705_v5  ;;  %v5174_v5 = vld [vmem:[#allocation38_spill] sm:$0xff] }
 0x1d7   :  { %2910 = vmatpush1.bf16.msra.mxu1 %v5093_v47  ;;  %1276 = vmatprep.mubr.f32.mxu1 %v5094_v9  ;;  %5095 = vst [vmem:[#allocation39_spill] sm:$0xff] %v4136_v36  ;;  %v4150_v47 = vsub.f32 %v1608_v48, %v1644_v25  ;;  %v4152_v9 = vsub.f32 %v1609_v43, %v1647_v30  ;;  %v5114_v48 = vld [vmem:[#allocation17_spill] sm:$0xff]  ;;  %v5115_v30 = vld [vmem:[#allocation18_spill] sm:$0xff]  ;;  %v5116_v25 = vld [vmem:[#allocation19_spill] sm:$0xff] }
 0x1d8   :  { %5097 = vst [vmem:[#allocation41_spill] sm:$0xff] %v4140_v27  ;;  %2912 = vmatprep.subr.bf16.mxu1 %v5098_v10  ;;  %3029 = vmatpush1.bf16.msra.mxu0 %v4136_v36  ;;  %5107 = vst [vmem:[#allocation44_spill] sm:$0xff] %v4158_v24  ;;  %v5108_v27 = vld [vmem:[#allocation12_spill] sm:$0xff]  ;;  %v5120_v29 = vld [vmem:[#allocation23_spill] sm:$0xff]  ;;  %v2949_v44 = vpack.c.bf16 %v5129_v18, %v5128_v8  ;;  %v5137_v8 = vand.u32 4294901760, %v3503_v6  ;;  %v5138_v18 = vand.u32 4294901760, %v3505_v7 }
 0x1d9   :  { %5102 = vst [vmem:[#allocation37_spill] sm:$0xff] %v4150_v47  ;;  %5103 = vst [vmem:[#allocation35_spill] sm:$0xff] %v4152_v9  ;;  %3030 = vmatprep.subr.bf16.mxu0 %v5105_v22  ;;  %v5117_v43 = vld [vmem:[#allocation20_spill] sm:$0xff]  ;;  %v5123_v36 = vld [vmem:[#allocation26_spill] sm:$0xff]  ;;  %v5127_v9 = vand.u32 4294901760, %v3472_v50  ;;  %v5134_v50 = vand.u32 4294901760, %v3497_v1 }
 0x1da   :  { %v5125_v24 = vld [vmem:[#allocation31_spill] sm:$0xff]  ;;  %v5141_v1 = vand.u32 4294901760, %v3562_v37  ;;  %v5144_v6 = vand.u32 4294901760, %v3654_v16  ;;  %v5145_v7 = vand.u32 4294901760, %v3656_v15  ;;  %v5148_v37 = vand.u32 4294901760, %v3662_v14 }
 0x1db   :  { %2914 = vmatpush1.bf16.msra.mxu1 %v5106_v31  ;;  %v2947_v47 = vpack.c.bf16 %v5127_v9, %v5126_v17  ;;  %v2953_v51 = vpack.c.bf16 %v5134_v50, %v5133_v49  ;;  %v5151_v16 = vand.u32 4294901760, %v3671_v38  ;;  %v5152_v15 = vand.u32 4294901760, %v3673_v39 }
 0x1dc   :  { %2916 = vmatprep.subr.bf16.mxu1 %v5108_v27  ;;  %3032 = vmatpush1.bf16.msra.mxu0 %v4143_v2  ;;  %v5122_v2 = vld [vmem:[#allocation25_spill] sm:$0xff]  ;;  %v2967_v17 = vpack.c.bf16 %v5148_v37, %v5147_v35  ;;  %v5155_v14 = vand.u32 4294901760, %v3692_v57  ;;  %v5158_v38 = vand.u32 4294901760, %v3698_v60  ;;  %v5159_v39 = vand.u32 4294901760, %v3701_v61  ;;  %v5168_v60 = vld [vmem:[#allocation32_spill] sm:$0xff] }
 0x1dd   :  { %3033 = vmatprep.subr.bf16.mxu0 %v5105_v22 }
 0x1de   :  { %v2975_v50 = vpack.c.bf16 %v5156_v26, %v5155_v14 }
 0x1df   :  { %2918 = vmatpush1.bf16.msra.mxu1 %v5110_v20 }
 0x1e0   :  { %2920 = vmatprep.subr.bf16.mxu1 %v5111_v19  ;;  %3035 = vmatpush1.bf16.msra.mxu0 %v4162_v21  ;;  %v5121_v21 = vld [vmem:[#allocation24_spill] sm:$0xff] }
 0x1e1   :  { %3036 = vmatprep.subr.bf16.mxu0 %v5105_v22 }
 0x1e3   :  { %2922 = vmatpush1.bf16.msra.mxu1 %v5113_v45 }
 0x1e4   :  { %2924 = vmatprep.subr.bf16.mxu1 %v5114_v48  ;;  %3038 = vmatpush1.bf16.msra.mxu0 %v4168_v63  ;;  %v5124_v63 = vld [vmem:[#allocation29_spill] sm:$0xff] }
 0x1e5   :  { %3039 = vmatprep.subr.bf16.mxu0 %v5105_v22  ;;  %v5130_v22 = vand.u32 4294901760, %v3479_v54  ;;  %v5136_v54 = vand.u32 4294901760, %v3501_v4  ;;  %v5143_v4 = vand.u32 4294901760, %v3652_v13  ;;  %v5150_v13 = vand.u32 4294901760, %v3666_v40 }
 0x1e6   :  { %v5157_v40 = vand.u32 4294901760, %v3696_v59 }
 0x1e7   :  { %2926 = vmatpush1.bf16.msra.mxu1 %v5115_v30 }
 0x1e8   :  { %2928 = vmatprep.subr.bf16.mxu1 %v5116_v25 }
 0x1eb   :  { %2930 = vmatpush1.bf16.msra.mxu1 %v5117_v43 }
 0x1ec   :  { %2932 = vmatprep.subr.bf16.mxu1 %v5118_v33 }
 0x1ef   :  { %2934 = vmatpush1.bf16.msra.mxu1 %v5119_v23 }
 0x1f0   :  { %2936 = vmatprep.subr.bf16.mxu1 %v5120_v29 }
 0x1f3   :  { %2938 = vmatpush1.bf16.msra.mxu1 %v5121_v21 }
 0x1f4   :  { %2940 = vmatprep.subr.bf16.mxu1 %v5122_v2 }
 0x1f7   :  { %2942 = vmatpush1.bf16.msra.mxu1 %v5123_v36  ;;  %v5131_v36 = vand.u32 4294901760, %v3481_v55  ;;  %v2955_v55 = vpack.c.bf16 %v5136_v54, %v5135_v53  ;;  %v5162_v54 = vld [vmem:[#allocation27_spill] sm:$0xff] }
 0x1f8   :  { %2944 = vmatprep.subr.bf16.mxu1 %v5124_v63  ;;  %v5163_v57 = vand.u32 4294901760, %v5162_v54 }
 0x1f9   :  { %v2951_v2 = vpack.c.bf16 %v5131_v36, %v5130_v22  ;;  %v2969_v22 = vpack.c.bf16 %v5150_v13, %v5149_v52  ;;  %v1621_v52 = vld [vmem:[%s4871_s4 + $0x88] sm:$0xff] }
 0x1fb   :  { %2946 = vmatpush1.bf16.msra.mxu1 %v5125_v24  ;;  %v5132_v24 = vand.u32 4294901760, %v3989_v56  ;;  %v5139_v56 = vand.u32 4294901760, %v3556_v34  ;;  %v5146_v34 = vand.u32 4294901760, %v3658_v32  ;;  %v5153_v32 = vand.u32 4294901760, %v3675_v41 }
 0x1fc   :  { %1248 = vmatprep.subr.mxu1 %v5064_v12  ;;  %v5160_v41 = vand.u32 4294901760, %v3703_v62  ;;  %v5172_v62 = vld [vmem:[#allocation16_spill] sm:$0xff] }
 0x1fd   :  { %v2959_v36 = vpack.c.bf16 %v5140_v0, %v5139_v56  ;;  %v2965_v9 = vpack.c.bf16 %v5146_v34, %v5145_v7  ;;  %v2973_v49 = vpack.c.bf16 %v5154_v11, %v5153_v32  ;;  %v5169_v56 = vand.u32 4294901760, %v5168_v60  ;;  %v5170_v0 = vld [vmem:[#allocation33_spill] sm:$0xff]  ;;  %v1618_v7 = vld [vmem:[%s4871_s4 + $0x70] sm:$0xff] }
 0x1fe   :  { %v2979_v53 = vpack.c.bf16 %v5160_v41, %v5159_v39  ;;  %v5171_v61 = vand.u32 4294901760, %v5170_v0  ;;  %v1619_v34 = vld [vmem:[%s4871_s4 + $0x78] sm:$0xff]  ;;  %v1622_v11 = vld [vmem:[%s4871_s4 + $0x90] sm:$0xff] }
 0x1ff   :  { %1250 = vmatpush1.msra.mxu1 %v5067_v46  ;;  %v1677_v35 = vand.u32 4294901760, %v1619_v34 }
 0x200   :  { %1280 = vmatmul.mubr.f32.vlgmr.msra.gmra.mrb[2].mxu1 %v5132_v24  ;;  %2948 = vmatprep.subr.bf16.mxu1 %v2947_v47  ;;  %v2957_v47 = vpack.c.bf16 %v5138_v18, %v5137_v8  ;;  %v2971_v24 = vpack.c.bf16 %v5152_v15, %v5151_v16  ;;  %v5165_v8 = vand.u32 4294901760, %v5164_v58  ;;  %v5166_v18 = vld [vmem:[#allocation30_spill] sm:$0xff] }
 0x201   :  { %2950 = vmatpush1.bf16.msra.mxu1 %v2949_v44  ;;  %1477 = vmatprep.mubr.f32.mxu1 %v3993_v28  ;;  %v2963_v44 = vpack.c.bf16 %v5144_v6, %v5143_v4  ;;  %v5167_v59 = vand.u32 4294901760, %v5166_v18  ;;  %v5177_v4 = vld [vmem:[#allocation8_spill] sm:$0xff]  ;;  %v5178_v6 = vld [vmem:[#allocation9_spill] sm:$0xff] }
 0x202   :  { %2952 = vmatprep.subr.bf16.mxu1 %v2951_v2  ;;  %v2961_v2 = vpack.c.bf16 %v5142_v3, %v5141_v1  ;;  %v5173_v1 = vand.u32 4294901760, %v5172_v62  ;;  %v5175_v3 = vand.u32 4294901760, %v5174_v5 }
 0x205   :  { %2954 = vmatpush1.bf16.msra.mxu1 %v2953_v51  ;;  %v2977_v51 = vpack.c.bf16 %v5158_v38, %v5157_v40  ;;  %v4366_v40 = vsub.f32 %v1619_v34, %v1677_v35  ;;  %v1624_v38 = vld [vmem:[%s4871_s4 + $0xa0] sm:$0x7f] }
 0x206   :  { %2956 = vmatprep.subr.bf16.mxu1 %v2955_v55  ;;  %v2981_v55 = vpack.c.bf16 %v5163_v57, %v5161_v42  ;;  %v4381_v57 = vsel %vm595_vm4, %v1624_v38, 0 }
 0x207   :  { %v4398_v0 = vand.u32 4294901760, %v4381_v57 }
 0x209   :  { %2958 = vmatpush1.bf16.msra.mxu1 %v2957_v47  ;;  %v2983_v47 = vpack.c.bf16 %v5167_v59, %v5165_v8  ;;  %v5183_v8 = vld [vmem:[#allocation40_spill] sm:$0xff]  ;;  %v5184_v59 = vld [vmem:[#allocation41_spill] sm:$0xff] }
 0x20a   :  { %2960 = vmatprep.subr.bf16.mxu1 %v2959_v36  ;;  %v2985_v36 = vpack.c.bf16 %v5171_v61, %v5169_v56  ;;  %v5015_v18 = vand.u32 4294901760, %v5183_v8  ;;  %v5185_v61 = vmov 0.0  }
 0x20c   :  { %v1736_v60 = vsub.f32 %v5183_v8, %v5015_v18 }
 0x20d   :  { %2962 = vmatpush1.bf16.msra.mxu1 %v2961_v2  ;;  %v5176_v2 = vld [vmem:[#allocation47_spill] sm:$0xff] }
 0x20e   :  { %2964 = vmatprep.subr.bf16.mxu1 %v2963_v44 }
 0x211   :  { %2966 = vmatpush1.bf16.msra.mxu1 %v2965_v9  ;;  %v1674_v9 = vand.u32 4294901760, %v1618_v7 }
 0x212   :  { %2968 = vmatprep.subr.bf16.mxu1 %v2967_v17  ;;  %v1620_v17 = vld [vmem:[%s4871_s4 + $0x80] sm:$0xff] }
 0x213   :  { %v4336_v37 = vpack.c.bf16 %v1677_v35, %v1674_v9  ;;  %v1680_v13 = vand.u32 4294901760, %v1620_v17 }
 0x215   :  { %2970 = vmatpush1.bf16.msra.mxu1 %v2969_v22  ;;  %v1683_v22 = vand.u32 4294901760, %v1621_v52  ;;  %v4373_v39 = vsub.f32 %v1620_v17, %v1680_v13 }
 0x216   :  { %2972 = vmatprep.subr.bf16.mxu1 %v2971_v24 }
 0x217   :  { %v4375_v41 = vsub.f32 %v1621_v52, %v1683_v22 }
 0x219   :  { %2974 = vmatpush1.bf16.msra.mxu1 %v2973_v49  ;;  %v1623_v49 = vld [vmem:[%s4871_s4 + $0x98] sm:$0xff] }
 0x21a   :  { %2976 = vmatprep.subr.bf16.mxu1 %v2975_v50  ;;  %v4364_v50 = vsub.f32 %v1618_v7, %v1674_v9  ;;  %v1689_v42 = vand.u32 4294901760, %v1623_v49 }
 0x21c   :  { %v4386_v58 = vsub.f32 %v1623_v49, %v1689_v42 }
 0x21d   :  { %2978 = vmatpush1.bf16.msra.mxu1 %v2977_v51  ;;  %v4371_v51 = vpack.c.bf16 %v1683_v22, %v1680_v13 }
 0x21e   :  { %2980 = vmatprep.subr.bf16.mxu1 %v2979_v53  ;;  %v1686_v53 = vand.u32 4294901760, %v1622_v11 }
 0x220   :  { %v4378_v54 = vsub.f32 %v1622_v11, %v1686_v53 }
 0x221   :  { %2982 = vmatpush1.bf16.msra.mxu1 %v2981_v55  ;;  %v4384_v55 = vpack.c.bf16 %v1689_v42, %v1686_v53 }
 0x222   :  { %2984 = vmatprep.subr.bf16.mxu1 %v2983_v47  ;;  %v5014_v47 = vand.u32 4294901760, %v5184_v59 }
 0x224   :  { %v1743_v56 = vsub.f32 %v5184_v59, %v5014_v47 }
 0x225   :  { %2986 = vmatpush1.bf16.msra.mxu1 %v2985_v36  ;;  %v1737_v36 = vand.u32 4294901760, %v1736_v60 }
 0x226   :  { %1449 = vmatprep.subr.mxu1 %v5173_v1  ;;  %v1744_v62 = vand.u32 4294901760, %v1743_v56  ;;  %v5186_v1 = vld [vmem:[#allocation36_spill] sm:$0xff] }
 0x227   :  { %v5013_v5 = vand.u32 4294901760, %v5186_v1 }
 0x229   :  { %1453 = vmatpush1.msra.mxu1 %v5175_v3  ;;  %v5187_v3 = vld [vmem:[#allocation34_spill] sm:$0xff] }
 0x22a   :  { %1479 = vmatmul.mubr.f32.vlgmr.msra.gmra.mrb[2].mxu1 %v5176_v2  ;;  %2988 = vmatprep.subr.bf16.mxu1 %v5177_v4  ;;  %v4403_v4 = vpack.c.bf16 %v1744_v62, %v1737_v36 }
 0x22b   :  { %2990 = vmatpush1.bf16.msra.mxu1 %v5178_v6  ;;  %1592 = vmatprep.mubr.f32.mxu1 %v3993_v28  ;;  %v5180_v28 = vld [vmem:[#allocation26_spill] sm:$0xff]  ;;  %v1750_v6 = vsub.f32 %v5186_v1, %v5013_v5 }
 0x22c   :  { %2992 = vmatprep.subr.bf16.mxu1 %v5098_v10  ;;  %v5179_v10 = vld [vmem:[#allocation25_spill] sm:$0xff] }
 0x22f   :  { %2994 = vmatpush1.bf16.msra.mxu1 %v5106_v31  ;;  %v1612_v31 = vld [vmem:[%s4871_s4 + $0x40] sm:$0xff] }
 0x230   :  { %2996 = vmatprep.subr.bf16.mxu1 %v5108_v27  ;;  %v5181_v27 = vld [vmem:[#allocation31_spill] sm:$0xff] }
 0x233   :  { %2998 = vmatpush1.bf16.msra.mxu1 %v5110_v20  ;;  %v1656_v20 = vand.u32 4294901760, %v1612_v31 }
 0x234   :  { %3000 = vmatprep.subr.bf16.mxu1 %v5111_v19 }
 0x235   :  { %v4345_v16 = vsub.f32 %v1612_v31, %v1656_v20  ;;  %v5188_v31 = vld [vmem:[#allocation37_spill] sm:$0xff] }
 0x237   :  { %3002 = vmatpush1.bf16.msra.mxu1 %v5113_v45  ;;  %v5007_v13 = vand.u32 4294901760, %v4345_v16 }
 0x238   :  { %3004 = vmatprep.subr.bf16.mxu1 %v5114_v48 }
 0x239   :  { %v1792_v49 = vsub.f32 %v4345_v16, %v5007_v13  ;;  %v5192_v13 = vld [vmem:[#allocation46_spill] sm:$0xff] }
 0x23b   :  { %3006 = vmatpush1.bf16.msra.mxu1 %v5115_v30  ;;  %v5182_v30 = vmov 0.0|0.0   ;;  %v1793_v53 = vand.u32 4294901760, %v1792_v49 }
 0x23c   :  { %3008 = vmatprep.subr.bf16.mxu1 %v5116_v25 }
 0x23f   :  { %3010 = vmatpush1.bf16.msra.mxu1 %v5117_v43  ;;  %v1616_v43 = vld [vmem:[%s4871_s4 + $0x60] sm:$0xff] }
 0x240   :  { %3012 = vmatprep.subr.bf16.mxu1 %v5118_v33  ;;  %v1617_v33 = vld [vmem:[%s4871_s4 + $0x68] sm:$0xff] }
 0x243   :  { %3014 = vmatpush1.bf16.msra.mxu1 %v5119_v23  ;;  %v1668_v23 = vand.u32 4294901760, %v1616_v43 }
 0x244   :  { %3016 = vmatprep.subr.bf16.mxu1 %v5120_v29  ;;  %v1671_v29 = vand.u32 4294901760, %v1617_v33 }
 0x245   :  { %v4360_v14 = vsub.f32 %v1616_v43, %v1668_v23 }
 0x246   :  { %v4326_v44 = vpack.c.bf16 %v1671_v29, %v1668_v23  ;;  %v4362_v26 = vsub.f32 %v1617_v33, %v1671_v29  ;;  %v5190_v33 = vld [vmem:[#allocation43_spill] sm:$0xff]  ;;  %v5191_v29 = vld [vmem:[#allocation44_spill] sm:$0xff] }
 0x247   :  { %3018 = vmatpush1.bf16.msra.mxu1 %v5121_v21  ;;  %v1613_v21 = vld [vmem:[%s4871_s4 + $0x48] sm:$0xff]  ;;  %v5009_v23 = vand.u32 4294901760, %v5190_v33  ;;  %v5008_v7 = vand.u32 4294901760, %v5191_v29 }
 0x248   :  { %3020 = vmatprep.subr.bf16.mxu1 %v5179_v10  ;;  %v1659_v19 = vand.u32 4294901760, %v1613_v21 }
 0x249   :  { %v1778_v9 = vsub.f32 %v5190_v33, %v5009_v23  ;;  %v1785_v35 = vsub.f32 %v5191_v29, %v5008_v7 }
 0x24a   :  { %v4306_v45 = vpack.c.bf16 %v1659_v19, %v1656_v20  ;;  %v4347_v15 = vsub.f32 %v1613_v21, %v1659_v19  ;;  %v5011_v21 = vand.u32 4294901760, %v5188_v31  ;;  %v5189_v20 = vld [vmem:[#allocation35_spill] sm:$0xff] }
 0x24b   :  { %3022 = vmatpush1.bf16.msra.mxu1 %v5180_v28  ;;  %v1751_v28 = vand.u32 4294901760, %v1750_v6  ;;  %v5010_v19 = vand.u32 4294901760, %v5189_v20  ;;  %v1779_v17 = vand.u32 4294901760, %v1778_v9  ;;  %v1786_v52 = vand.u32 4294901760, %v1785_v35 }
 0x24c   :  { %3024 = vmatprep.subr.bf16.mxu1 %v5124_v63  ;;  %3041 = vmatpush1.bf16.msra.mxu0 %v4306_v45  ;;  %v5006_v22 = vand.u32 4294901760, %v4347_v15 }
 0x24d   :  { %3042 = vmatprep.subr.bf16.mxu0 %v5182_v30  ;;  %v4435_v11 = vpack.c.bf16 %v1786_v52, %v1779_v17  ;;  %v4996_v17 = vand.u32 4294901760, %v4364_v50  ;;  %v4997_v52 = vand.u32 4294901760, %v4366_v40 }
 0x24e   :  { %v1799_v38 = vsub.f32 %v4347_v15, %v5006_v22 }
 0x24f   :  { %3026 = vmatpush1.bf16.msra.mxu1 %v5181_v27 }
 0x250   :  { %1566 = vmatprep.subr.mxu1 %v5064_v12  ;;  %v1614_v12 = vld [vmem:[%s4871_s4 + $0x50] sm:$0xff]  ;;  %v1800_v42 = vand.u32 4294901760, %v1799_v38  ;;  %v1834_v38 = vsub.f32 %v4364_v50, %v4996_v17  ;;  %v5000_v17 = vand.u32 4294901760, %v4378_v54 }
 0x251   :  { %v1662_v63 = vand.u32 4294901760, %v1614_v12 }
 0x252   :  { %v4445_v36 = vpack.c.bf16 %v1800_v42, %v1793_v53  ;;  %v1841_v53 = vsub.f32 %v4366_v40, %v4997_v52  ;;  %v1835_v42 = vand.u32 4294901760, %v1834_v38  ;;  %v5001_v38 = vand.u32 4294901760, %v4386_v58 }
 0x253   :  { %1568 = vmatpush1.msra.mxu1 %v5067_v46  ;;  %v1615_v46 = vld [vmem:[%s4871_s4 + $0x58] sm:$0xff]  ;;  %v4349_v24 = vsub.f32 %v1614_v12, %v1662_v63  ;;  %v1862_v52 = vsub.f32 %v4378_v54, %v5000_v17  ;;  %v3100_v17 = vpack.c.bf16 %v4347_v15, %v4345_v16  ;;  %s3336_s4 = smov 110  }
 0x254   :  { %1594 = vmatmul.mubr.f32.vlgmr.msra.gmra.mrb[2].mxu1 %v5176_v2  ;;  %v1665_v48 = vand.u32 4294901760, %v1615_v46  ;;  %v5012_v2 = vand.u32 4294901760, %v5187_v3 }
 0x255   :  { %v5005_v60 = vand.u32 4294901760, %v4349_v24 }
 0x256   :  { %v4316_v25 = vpack.c.bf16 %v1665_v48, %v1662_v63  ;;  %v4351_v32 = vsub.f32 %v1615_v46, %v1665_v48  ;;  %v1757_v10 = vsub.f32 %v5187_v3, %v5012_v2  ;;  %v1764_v46 = vsub.f32 %v5188_v31, %v5011_v21 }
 0x257   :  { %v1771_v63 = vsub.f32 %v5189_v20, %v5010_v19  ;;  %v1806_v62 = vsub.f32 %v4349_v24, %v5005_v60 }
 0x258   :  { %3044 = vmatpush1.bf16.msra.mxu0 %v4316_v25  ;;  %v1758_v27 = vand.u32 4294901760, %v1757_v10  ;;  %v1765_v48 = vand.u32 4294901760, %v1764_v46  ;;  %v5004_v56 = vand.u32 4294901760, %v4351_v32  ;;  %v4999_v46 = vand.u32 4294901760, %v4362_v26 }
 0x259   :  { %3045 = vmatprep.subr.bf16.mxu0 %v5182_v30  ;;  %v1772_v43 = vand.u32 4294901760, %v1771_v63  ;;  %v1807_v10 = vand.u32 4294901760, %v1806_v62  ;;  %v1842_v62 = vand.u32 4294901760, %v1841_v53 }
 0x25a   :  { %v4415_v12 = vpack.c.bf16 %v1758_v27, %v1751_v28  ;;  %v1813_v6 = vsub.f32 %v4351_v32, %v5004_v56  ;;  %v5003_v27 = vand.u32 4294901760, %v4360_v14 }
 0x25b   :  { %v4425_v34 = vpack.c.bf16 %v1772_v43, %v1765_v48  ;;  %v1827_v43 = vsub.f32 %v4362_v26, %v4999_v46 }
 0x25c   :  { %3047 = vmatpush1.bf16.msra.mxu0 %v4326_v44  ;;  %v1814_v28 = vand.u32 4294901760, %v1813_v6  ;;  %v1820_v48 = vsub.f32 %v4360_v14, %v5003_v27  ;;  %v4998_v6 = vand.u32 4294901760, %v4373_v39 }
 0x25d   :  { %3048 = vmatprep.subr.bf16.mxu0 %v5182_v30  ;;  %v1828_v35 = vand.u32 4294901760, %v1827_v43 }
 0x25e   :  { %v4455_v63 = vpack.c.bf16 %v1814_v28, %v1807_v10  ;;  %v1821_v9 = vand.u32 4294901760, %v1820_v48  ;;  %v5002_v10 = vand.u32 4294901760, %v4375_v41  ;;  %v3079_v28 = vpack.c.bf16 %v1842_v62, %v1835_v42 }
 0x25f   :  { %v1848_v48 = vsub.f32 %v4373_v39, %v4998_v6  ;;  %v1869_v42 = vsub.f32 %v4386_v58, %v5001_v38  ;;  %v1863_v62 = vand.u32 4294901760, %v1862_v52  ;;  %v3103_v52 = vpack.c.bf16 %v4351_v32, %v4349_v24 }
 0x260   :  { %3050 = vmatpush1.bf16.msra.mxu0 %v4336_v37  ;;  %v4465_v49 = vpack.c.bf16 %v1828_v35, %v1821_v9  ;;  %v1855_v43 = vsub.f32 %v4375_v41, %v5002_v10  ;;  %v3115_v38 = vpack.c.bf16 %v4386_v58, %v4378_v54 }
 0x261   :  { %3051 = vmatprep.subr.bf16.mxu0 %v5182_v30  ;;  %v1849_v9 = vand.u32 4294901760, %v1848_v48  ;;  %v1870_v6 = vand.u32 4294901760, %v1869_v42  ;;  %v3088_v48 = vpack.c.bf16 %v5184_v59, %v5183_v8  ;;  %v3109_v42 = vpack.c.bf16 %v4366_v40, %v4364_v50 }
 0x262   :  { %v1856_v35 = vand.u32 4294901760, %v1855_v43  ;;  %v3091_v43 = vpack.c.bf16 %v5187_v3, %v5186_v1 }
 0x263   :  { %v3085_v46 = vpack.c.bf16 %v1870_v6, %v1863_v62  ;;  %v3106_v6 = vpack.c.bf16 %v4362_v26, %v4360_v14  ;;  %v3112_v62 = vpack.c.bf16 %v4375_v41, %v4373_v39 }
 0x264   :  { %3053 = vmatpush1.bf16.msra.mxu0 %v4371_v51  ;;  %v3082_v53 = vpack.c.bf16 %v1856_v35, %v1849_v9  ;;  %v3094_v9 = vpack.c.bf16 %v5189_v20, %v5188_v31  ;;  %v3097_v35 = vpack.c.bf16 %v5191_v29, %v5190_v33 }
 0x265   :  { %3054 = vmatprep.subr.bf16.mxu0 %v5182_v30 }
 0x268   :  { %3056 = vmatpush1.bf16.msra.mxu0 %v4384_v55 }
 0x269   :  { %1691 = vmatprep.subr.mxu0 %v5185_v61 }
 0x26c   :  { %1693 = vmatpush1.msra.mxu0 %v4398_v0 }
 0x26d   :  { %3057 = vmatprep.subr.bf16.mxu0 %v5182_v30 }
 0x327   :  { %v1595_v10 = vpop.f32.mrb[2].mxu1 }
 0x328   :  { %3267 = vtanh.f32 %v1595_v10  ;;  %v1597_v27 = vpop.f32.mrb[3].mxu1 }
 0x329   :  { %3269 = vtanh.f32 %v1597_v27 }
 0x332   :  { %v3268_v56 = vpop.eup %3267 }
 0x333   :  { %v3270_v60 = vpop.eup %3269  ;;  %v4509_v22 = vand.u32 4294901760, %v3268_v56 }
 0x334   :  { %v1602_v7 = vsel %vm545_vm5, %v3270_v60, %v5192_v13 }
 0x335   :  { %v4514_v23 = vsub.f32 %v3268_v56, %v4509_v22  ;;  %v1603_v19 = vsel %vm547_vm6, %v1602_v7, 1.0  ;;  %v5196_v7 = vld [vmem:[#allocation10_spill] sm:$0xff]  ;;  %v5199_v56 = vand.u32 4294901760, %v5186_v1  ;;  %v5205_v1 = vand.u32 4294901760, %v4345_v16 }
 0x336   :  { %v1626_v21 = vsel %vm591_vm7, %v1603_v19, 0  ;;  %v5194_v19 = vld [vmem:[#allocation42_spill] sm:$0xff]  ;;  %v5211_v16 = vand.u32 4294901760, %v4364_v50 }
 0x337   :  { %v4518_v2 = vand.u32 4294901760, %v1626_v21  ;;  %v1724_v10 = vand.u32 4294901760, %v4514_v23 }
 0x339   :  { %v1717_v27 = vsub.f32 %v1626_v21, %v4518_v2  ;;  %v1725_v47 = vsub.f32 %v4514_v23, %v1724_v10 }
 0x33b   :  { %v1718_v5 = vand.u32 4294901760, %v1717_v27  ;;  %v1726_v60 = vand.u32 4294901760, %v1725_v47 }
 0x33d   :  { %v1719_v18 = vsub.f32 %v1717_v27, %v1718_v5 }
 0x33f   :  { %v1720_v13 = vand.u32 4294901760, %v1719_v18  ;;  %v4540_v18 = vsub.f32 %v4381_v57, %v4398_v0  ;;  %v5193_v57 = vld [vmem:[#allocation39_spill] sm:$0xff] }
 0x341   :  { %1721 = vmatprep.mubr.f32.mxu0 %v1720_v13  ;;  %v1875_v47 = vand.u32 4294901760, %v4540_v18 }
 0x342   :  { %1727 = vmatmul.mubr.f32.vlgmr.msra.gmra.mrb[2].mxu0 %v1726_v60 }
 0x343   :  { %3059 = vmatpush1.bf16.msra.mxu0 %v4403_v4  ;;  %1902 = vmatprep.mubr.f32.mxu0 %v4518_v2  ;;  %v1876_v4 = vsub.f32 %v4540_v18, %v1875_v47 }
 0x344   :  { %3060 = vmatprep.subr.bf16.mxu0 %v5182_v30 }
 0x345   :  { %v1877_v21 = vand.u32 4294901760, %v1876_v4 }
 0x347   :  { %3062 = vmatpush1.bf16.msra.mxu0 %v4415_v12  ;;  %v5195_v12 = vld [vmem:[#allocation45_spill] sm:$0xff] }
 0x348   :  { %3063 = vmatprep.subr.bf16.mxu0 %v5182_v30 }
 0x34b   :  { %3065 = vmatpush1.bf16.msra.mxu0 %v4425_v34  ;;  %v5198_v34 = vand.u32 4294901760, %v5184_v59  ;;  %v5202_v59 = vand.u32 4294901760, %v5189_v20  ;;  %v5208_v20 = vand.u32 4294901760, %v4351_v32  ;;  %v5214_v32 = vand.u32 4294901760, %v4375_v41 }
 0x34c   :  { %3066 = vmatprep.subr.bf16.mxu0 %v5182_v30 }
 0x34f   :  { %3068 = vmatpush1.bf16.msra.mxu0 %v4435_v11 }
 0x350   :  { %3069 = vmatprep.subr.bf16.mxu0 %v5182_v30 }
 0x353   :  { %3071 = vmatpush1.bf16.msra.mxu0 %v4445_v36  ;;  %v5200_v36 = vand.u32 4294901760, %v5187_v3  ;;  %v5206_v3 = vand.u32 4294901760, %v4347_v15  ;;  %v5212_v15 = vand.u32 4294901760, %v4366_v40 }
 0x354   :  { %3072 = vmatprep.subr.bf16.mxu0 %v5182_v30 }
 0x357   :  { %3074 = vmatpush1.bf16.msra.mxu0 %v4455_v63 }
 0x358   :  { %3075 = vmatprep.subr.bf16.mxu0 %v5182_v30 }
 0x35b   :  { %3077 = vmatpush1.bf16.msra.mxu0 %v4465_v49 }
 0x35c   :  { %3078 = vmatprep.subr.bf16.mxu0 %v5182_v30 }
 0x35f   :  { %3080 = vmatpush1.bf16.msra.mxu0 %v3079_v28  ;;  %v3160_v28 = vpack.c.bf16 %v5206_v3, %v5205_v1 }
 0x360   :  { %3081 = vmatprep.subr.bf16.mxu0 %v5182_v30 }
 0x363   :  { %3083 = vmatpush1.bf16.msra.mxu0 %v3082_v53 }
 0x364   :  { %3084 = vmatprep.subr.bf16.mxu0 %v5182_v30 }
 0x367   :  { %3086 = vmatpush1.bf16.msra.mxu0 %v3085_v46  ;;  %v3151_v46 = vpack.c.bf16 %v5200_v36, %v5199_v56 }
 0x368   :  { %1872 = vmatprep.subr.mxu0 %v5185_v61 }
 0x36b   :  { %1878 = vmatpush1.msra.mxu0 %v1877_v21 }
 0x36c   :  { %1904 = vmatmul.mubr.f32.vlgmr.msra.gmra.mrb[2].mxu0 %v4509_v22  ;;  %3087 = vmatprep.subr.bf16.mxu0 %v5182_v30 }
 0x36d   :  { %3089 = vmatpush1.bf16.msra.mxu0 %v3088_v48  ;;  %2017 = vmatprep.mubr.f32.mxu0 %v1717_v27  ;;  %v3169_v48 = vpack.c.bf16 %v5212_v15, %v5211_v16 }
 0x36e   :  { %3090 = vmatprep.subr.bf16.mxu0 %v5182_v30 }
 0x371   :  { %3092 = vmatpush1.bf16.msra.mxu0 %v3091_v43 }
 0x372   :  { %3093 = vmatprep.subr.bf16.mxu0 %v5182_v30 }
 0x375   :  { %3095 = vmatpush1.bf16.msra.mxu0 %v3094_v9 }
 0x376   :  { %3096 = vmatprep.subr.bf16.mxu0 %v5182_v30 }
 0x379   :  { %3098 = vmatpush1.bf16.msra.mxu0 %v3097_v35 }
 0x37a   :  { %3099 = vmatprep.subr.bf16.mxu0 %v5182_v30 }
 0x37d   :  { %3101 = vmatpush1.bf16.msra.mxu0 %v3100_v17  ;;  %v5204_v17 = vand.u32 4294901760, %v5191_v29  ;;  %v5210_v29 = vand.u32 4294901760, %v4362_v26  ;;  %v5216_v26 = vand.u32 4294901760, %v4386_v58 }
 0x37e   :  { %3102 = vmatprep.subr.bf16.mxu0 %v5182_v30 }
 0x381   :  { %3104 = vmatpush1.bf16.msra.mxu0 %v3103_v52 }
 0x382   :  { %3105 = vmatprep.subr.bf16.mxu0 %v5182_v30 }
 0x385   :  { %3107 = vmatpush1.bf16.msra.mxu0 %v3106_v6 }
 0x386   :  { %3108 = vmatprep.subr.bf16.mxu0 %v5182_v30 }
 0x389   :  { %3110 = vmatpush1.bf16.msra.mxu0 %v3109_v42 }
 0x38a   :  { %3111 = vmatprep.subr.bf16.mxu0 %v5182_v30 }
 0x38d   :  { %3113 = vmatpush1.bf16.msra.mxu0 %v3112_v62 }
 0x38e   :  { %3114 = vmatprep.subr.bf16.mxu0 %v5182_v30 }
 0x391   :  { %3116 = vmatpush1.bf16.msra.mxu0 %v3115_v38 }
 0x392   :  { %1989 = vmatprep.subr.mxu0 %v5185_v61 }
 0x395   :  { %1992 = vmatpush1.msra.mxu0 %v4540_v18 }
 0x396   :  { %2020 = vmatmul.mubr.f32.vlgmr.msra.gmra.mrb[2].mxu0 %v4514_v23  ;;  %3117 = vmatprep.subr.bf16.mxu0 %v5182_v30  ;;  %v5203_v23 = vand.u32 4294901760, %v5190_v33  ;;  %v5209_v33 = vand.u32 4294901760, %v4360_v14  ;;  %v5215_v14 = vand.u32 4294901760, %v4378_v54 }
 0x397   :  { %3119 = vmatpush1.bf16.msra.mxu0 %v5193_v57  ;;  %2113 = vmatprep.mubr.f32.mxu0 %v1718_v5  ;;  %v5197_v5 = vand.u32 4294901760, %v5183_v8  ;;  %v5201_v8 = vand.u32 4294901760, %v5188_v31  ;;  %v5207_v31 = vand.u32 4294901760, %v4349_v24  ;;  %v5213_v24 = vand.u32 4294901760, %v4373_v39 }
 0x398   :  { %3120 = vmatprep.subr.bf16.mxu0 %v5182_v30  ;;  %v3157_v49 = vpack.c.bf16 %v5204_v17, %v5203_v23  ;;  %v3166_v53 = vpack.c.bf16 %v5210_v29, %v5209_v33  ;;  %v3175_v9 = vpack.c.bf16 %v5216_v26, %v5215_v14 }
 0x399   :  { %v3148_v11 = vpack.c.bf16 %v5198_v34, %v5197_v5  ;;  %v3154_v63 = vpack.c.bf16 %v5202_v59, %v5201_v8  ;;  %v3163_v38 = vpack.c.bf16 %v5208_v20, %v5207_v31  ;;  %v3172_v43 = vpack.c.bf16 %v5214_v32, %v5213_v24 }
 0x39b   :  { %3122 = vmatpush1.bf16.msra.mxu0 %v5194_v19 }
 0x39c   :  { %3123 = vmatprep.subr.bf16.mxu0 %v5182_v30 }
 0x39f   :  { %3125 = vmatpush1.bf16.msra.mxu0 %v5195_v12 }
 0x3a0   :  { %3126 = vmatprep.subr.bf16.mxu0 %v5182_v30 }
 0x3a3   :  { %3128 = vmatpush1.bf16.msra.mxu0 %v5196_v7 }
 0x3a4   :  { %3129 = vmatprep.subr.bf16.mxu0 %v5182_v30 }
 0x3a7   :  { %3131 = vmatpush1.bf16.msra.mxu0 %v4306_v45 }
 0x3a8   :  { %3132 = vmatprep.subr.bf16.mxu0 %v5182_v30 }
 0x3ab   :  { %3134 = vmatpush1.bf16.msra.mxu0 %v4316_v25 }
 0x3ac   :  { %3135 = vmatprep.subr.bf16.mxu0 %v5182_v30 }
 0x3af   :  { %3137 = vmatpush1.bf16.msra.mxu0 %v4326_v44 }
 0x3b0   :  { %3138 = vmatprep.subr.bf16.mxu0 %v5182_v30 }
 0x3b3   :  { %3140 = vmatpush1.bf16.msra.mxu0 %v4336_v37 }
 0x3b4   :  { %3141 = vmatprep.subr.bf16.mxu0 %v5182_v30 }
 0x3b7   :  { %3143 = vmatpush1.bf16.msra.mxu0 %v4371_v51 }
 0x3b8   :  { %3144 = vmatprep.subr.bf16.mxu0 %v5182_v30 }
 0x3bb   :  { %3146 = vmatpush1.bf16.msra.mxu0 %v4384_v55 }
 0x3bc   :  { %2085 = vmatprep.subr.mxu0 %v5185_v61 }
 0x3bf   :  { %2087 = vmatpush1.msra.mxu0 %v4398_v0 }
 0x3c0   :  { %2117 = vmatmul.mubr.f32.vlgmr.msra.gmra.mrb[2].mxu0 %v1724_v10  ;;  %3147 = vmatprep.subr.bf16.mxu0 %v5182_v30 }
 0x3c1   :  { %3149 = vmatpush1.bf16.msra.mxu0 %v3148_v11  ;;  %2250 = vmatprep.mubr.f32.mxu0 %v4518_v2 }
 0x3c2   :  { %3150 = vmatprep.subr.bf16.mxu0 %v5182_v30 }
 0x3c5   :  { %3152 = vmatpush1.bf16.msra.mxu0 %v3151_v46 }
 0x3c6   :  { %3153 = vmatprep.subr.bf16.mxu0 %v5182_v30 }
 0x3c9   :  { %3155 = vmatpush1.bf16.msra.mxu0 %v3154_v63 }
 0x3ca   :  { %3156 = vmatprep.subr.bf16.mxu0 %v5182_v30 }
 0x3cd   :  { %3158 = vmatpush1.bf16.msra.mxu0 %v3157_v49 }
 0x3ce   :  { %3159 = vmatprep.subr.bf16.mxu0 %v5182_v30 }
 0x3d1   :  { %3161 = vmatpush1.bf16.msra.mxu0 %v3160_v28 }
 0x3d2   :  { %3162 = vmatprep.subr.bf16.mxu0 %v5182_v30 }
 0x3d5   :  { %3164 = vmatpush1.bf16.msra.mxu0 %v3163_v38 }
 0x3d6   :  { %3165 = vmatprep.subr.bf16.mxu0 %v5182_v30 }
 0x3d9   :  { %3167 = vmatpush1.bf16.msra.mxu0 %v3166_v53 }
 0x3da   :  { %3168 = vmatprep.subr.bf16.mxu0 %v5182_v30 }
 0x3dd   :  { %3170 = vmatpush1.bf16.msra.mxu0 %v3169_v48 }
 0x3de   :  { %3171 = vmatprep.subr.bf16.mxu0 %v5182_v30 }
 0x3e1   :  { %3173 = vmatpush1.bf16.msra.mxu0 %v3172_v43 }
 0x3e2   :  { %3174 = vmatprep.subr.bf16.mxu0 %v5182_v30 }
 0x3e5   :  { %3176 = vmatpush1.bf16.msra.mxu0 %v3175_v9 }
 0x3e6   :  { %2222 = vmatprep.subr.mxu0 %v5185_v61 }
 0x3e9   :  { %2226 = vmatpush1.msra.mxu0 %v1875_v47 }
 0x3ea   :  { %2252 = vmatmul.mubr.f32.vlgmr.msra.gmra.mrb[2].mxu0 %v4509_v22  ;;  %3177 = vmatprep.subr.bf16.mxu0 %v5182_v30 }
 0x3eb   :  { %3179 = vmatpush1.bf16.msra.mxu0 %v5193_v57  ;;  %2343 = vmatprep.mubr.f32.mxu0 %v4518_v2 }
 0x3ec   :  { %3180 = vmatprep.subr.bf16.mxu0 %v5182_v30 }
 0x3ef   :  { %3182 = vmatpush1.bf16.msra.mxu0 %v5194_v19 }
 0x3f0   :  { %3183 = vmatprep.subr.bf16.mxu0 %v5182_v30 }
 0x3f3   :  { %3185 = vmatpush1.bf16.msra.mxu0 %v5195_v12 }
 0x3f4   :  { %3186 = vmatprep.subr.bf16.mxu0 %v5182_v30 }
 0x3f7   :  { %3188 = vmatpush1.bf16.msra.mxu0 %v5196_v7 }
 0x3f8   :  { %3189 = vmatprep.subr.bf16.mxu0 %v5182_v30 }
 0x3fb   :  { %3191 = vmatpush1.bf16.msra.mxu0 %v4306_v45 }
 0x3fc   :  { %3192 = vmatprep.subr.bf16.mxu0 %v5182_v30 }
 0x3ff   :  { %3194 = vmatpush1.bf16.msra.mxu0 %v4316_v25 }
 0x400   :  { %3195 = vmatprep.subr.bf16.mxu0 %v5182_v30 }
 0x403   :  { %3197 = vmatpush1.bf16.msra.mxu0 %v4326_v44 }
 0x404   :  { %3198 = vmatprep.subr.bf16.mxu0 %v5182_v30 }
 0x407   :  { %3200 = vmatpush1.bf16.msra.mxu0 %v4336_v37 }
 0x408   :  { %3201 = vmatprep.subr.bf16.mxu0 %v5182_v30 }
 0x40b   :  { %3203 = vmatpush1.bf16.msra.mxu0 %v4371_v51 }
 0x40c   :  { %3204 = vmatprep.subr.bf16.mxu0 %v5182_v30 }
 0x40f   :  { %3206 = vmatpush1.bf16.msra.mxu0 %v4384_v55 }
 0x410   :  { %2317 = vmatprep.subr.mxu0 %v5185_v61 }
 0x413   :  { %2319 = vmatpush1.msra.mxu0 %v4398_v0 }
 0x414   :  { %2345 = vmatmul.mubr.f32.vlgmr.msra.gmra.mrb[2].mxu0 %v4509_v22 }
 0x4e7   :  { %v4686_v45 = vpop.f32.mrb[2].mxu0 }
 0x4e8   :  { %2359 = vrot.lane.b32.xlu0 %v4686_v45, %s3336_s4  ;;  %2351 = vrot.lane.b32.xlu1 %v4686_v45, %s3337_s8  ;;  %v2348_v25 = vpop.f32.mrb[3].mxu0  ;;  %v2411_v21 = vand.u32 2147483647, %v4686_v45 }
 0x4e9   :  { %v2477_v25 = vmax.f32 %v4686_v45, 0.0 }
 0x4ea   :  { %v2412_v12 = vsub.f32 0.0, %v2411_v21 }
 0x4ec   :  { %2355 = vrot.lane.b32.xlu1 %v4686_v45, %s3338_s9 }
 0x4f0   :  { %2363 = vrot.lane.b32.xlu1 %v4686_v45, %s3339_s10 }
 0x55a   :  { %v2352_v30 = vpop.permute.xlu1 %2351  ;;  %v2360_v40 = vpop.permute.xlu0 %2359 }
 0x55b   :  { %v2354_v44 = vmax.f32 %v4686_v45, %v2352_v30 }
 0x55e   :  { %v2356_v37 = vpop.permute.xlu1 %2355 }
 0x55f   :  { %v2358_v50 = vmax.f32 %v2354_v44, %v2356_v37 }
 0x561   :  { %v2362_v51 = vmax.f32 %v2358_v50, %v2360_v40 }
 0x562   :  { %v2364_v39 = vpop.permute.xlu1 %2363 }
 0x563   :  { %v2366_v41 = vmax.f32 %v2362_v51, %v2364_v39 }
 0x565   :  { %2389 = vrot.lane.b32.xlu1 %v2366_v41, %s3339_s10  ;;  %2386 = vrot.lane.b32.xlu0 %v2366_v41, %s3340_s11 }
 0x569   :  { %2395 = vrot.lane.b32.xlu1 %v2366_v41, %s3338_s9  ;;  %2392 = vrot.lane.b32.xlu0 %v2366_v41, %s3336_s4 }
 0x56d   :  { %2368 = vrot.lane.b32.xlu1 %v2366_v41, %s3332_s23  ;;  %2398 = vrot.lane.b32.xlu0 %v2366_v41, %s3337_s8 }
 0x571   :  { %2374 = vrot.lane.b32.xlu1 %v2366_v41, %s3341_s12  ;;  %2371 = vrot.lane.b32.xlu0 %v2366_v41, %s3342_s13 }
 0x575   :  { %2377 = vrot.lane.b32.xlu0 %v2366_v41, %s3343_s14 }
 0x5d7   :  { %v2390_v54 = vpop.permute.xlu1 %2389  ;;  %v2387_v55 = vpop.permute.xlu0 %2386 }
 0x5d8   :  { %v2401_v58 = vsel %vm30_vm1, %v2387_v55, %v2390_v54 }
 0x5db   :  { %v2396_v0 = vpop.permute.xlu1 %2395  ;;  %v2393_v2 = vpop.permute.xlu0 %2392 }
 0x5dc   :  { %v2402_v22 = vsel %vm32_vm2, %v2401_v58, %v2393_v2 }
 0x5dd   :  { %v2403_v6 = vsel %vm2382_vm8, %v2402_v22, %v2396_v0 }
 0x5df   :  { %v2369_v35 = vpop.permute.xlu1 %2368  ;;  %v2399_v52 = vpop.permute.xlu0 %2398 }
 0x5e0   :  { %v2404_v42 = vsel %vm2384_vm9, %v2403_v6, %v2399_v52  ;;  %v2380_v62 = vsel %vm30_vm1, %v2366_v41, %v2369_v35 }
 0x5e1   :  { %2407 = vrot.lane.b32.xlu1 %v2404_v42, %s3344_s15 }
 0x5e3   :  { %v2372_v10 = vpop.permute.xlu0 %2371  ;;  %v2375_v27 = vpop.permute.xlu1 %2374 }
 0x5e4   :  { %v2381_v13 = vsel %vm32_vm2, %v2380_v62, %v2372_v10  ;;  %v4767_v62 = vld [vmem:[%s4867_s0] sm:$0xff]  ;;  %s3356_s0 = smov [#allocation4]  }
 0x5e5   :  { %v2383_v60 = vsel %vm2382_vm8, %v2381_v13, %v2375_v27  ;;  %v4770_v10 = vclamps-f32 %v4767_v62, 1.0  ;;  %vm2708_vm6 = vcmp.ge.f32.partialorder %v4767_v62, -1.0  ;;  %vm2709_vm7 = vcmp.le.f32.partialorder %v4767_v62, 1.0  ;;  %s2731_s28 = sshll.u32 %s3356_s0, 4  ;;  %s2732_s28 = int_to_ptr.vmem [resolvable:$true] %s2731_s28 }
 0x5e6   :  { %vm4827_vm8 = vmand %vm2708_vm6, %vm2709_vm7  ;;  %s3284_s29 = scalar_lea.vmem %s2732_s28, 128  ;;  %p3289_p1 = scmp.lt.s32.totalorder %s2732_s28, %s2732_s28 }
 0x5e7   :  { %v2378_v18 = vpop.permute.xlu0 %2377  ;;  %p3285_p0 = scmp.ne.s32.totalorder %s2732_s28, %s3284_s29  ;;  %p3290_p2 = scmp.lt.s32.totalorder %s3284_s29, %s3284_s29 }
 0x5e8   :  { %v2385_v47 = vsel %vm2384_vm9, %v2383_v60, %v2378_v18 }
 0x5e9   :  { %v2405_v4 = vsub.f32 %v4686_v45, %v2385_v47  ;;  %p3291_p3 = por %p3290_p2, %p3289_p1 }
 0x5eb   :  { %p3292_p4 = pnand %p3291_p3, %p3285_p0 }
 0x653   :  { %v2408_v57 = vpop.permute.xlu1 %2407 }
 0x654   :  { %v2410_v19 = vsub.f32 %v4686_v45, %v2408_v57 }
 0x656   :  { %v2414_v7 = vsel %vm2413_vm10, %v2405_v4, %v2410_v19 }
 0x657   :  { %v2416_v5 = vsel %vm2415_vm11, %v2414_v7, %v2412_v12 }
 0x658   :  { %v2417_v34 = vmul.f32 1.442695, %v2416_v5 }
 0x65a   :  { %3271 = vpow2.f32 %v2417_v34 }
 0x664   :  { %v4714_v11 = vpop.eup %3271 }
 0x665   :  { %2424 = vrot.lane.b32.xlu1 %v4714_v11, %s3338_s9  ;;  %2420 = vrot.lane.b32.xlu0 %v4714_v11, %s3337_s8  ;;  %v2478_v31 = vadd.f32 1.0, %v4714_v11 }
 0x669   :  { %2432 = vrot.lane.b32.xlu1 %v4714_v11, %s3339_s10  ;;  %2428 = vrot.lane.b32.xlu0 %v4714_v11, %s3336_s4 }
 0x6d7   :  { %v2425_v56 = vpop.permute.xlu1 %2424  ;;  %v2421_v36 = vpop.permute.xlu0 %2420 }
 0x6d8   :  { %v2423_v46 = vadd.f32 %v4714_v11, %v2421_v36 }
 0x6da   :  { %v2427_v8 = vadd.f32 %v2425_v56, %v2423_v46 }
 0x6db   :  { %v2429_v59 = vpop.permute.xlu0 %2428  ;;  %v2433_v23 = vpop.permute.xlu1 %2432 }
 0x6dc   :  { %v2431_v63 = vadd.f32 %v2429_v59, %v2427_v8 }
 0x6de   :  { %v2435_v17 = vadd.f32 %v2433_v23, %v2431_v63 }
 0x6e0   :  { %2437 = vrot.lane.b32.xlu0 %v2435_v17, %s3339_s10 }
 0x752   :  { %v2438_v49 = vpop.permute.xlu0 %2437 }
 0x753   :  { %v2440_v1 = vsel %vm30_vm1, %v2435_v17, %v2438_v49 }
 0x754   :  { %3273 = vrcp.f32 %v2440_v1 }
 0x755   :  { %3275 = vlog2.f32 %v2478_v31 }
 0x75e   :  { %v3274_v3 = vpop.eup %3273 }
 0x75f   :  { %v4727_v28 = vmul.f32 2.0, %v3274_v3  ;;  %v3276_v24 = vpop.eup %3275 }
 0x760   :  { %v2480_v9 = vmul.f32 0.6931472, %v3276_v24 }
 0x761   :  { %2465 = vrot.lane.b32.xlu0 %v4727_v28, %s3345_s16  ;;  %2461 = vrot.lane.b32.xlu1 %v4727_v28, %s3344_s15  ;;  %v2443_v0 = vmul.f32 %v4714_v11, %v4727_v28 }
 0x762   :  { %v2481_v37 = vadd.f32 %v2480_v9, %v2477_v25 }
 0x763   :  { %v2743_v13 = vadd.f32 -1.0, %v2443_v0 }
 0x765   :  { %2469 = vrot.lane.b32.xlu0 %v4727_v28, %s3346_s17  ;;  %2445 = vrot.lane.b32.xlu1 %v4727_v28, %s3332_s23  ;;  %s3348_s23 = smov 68   ;;  %vm2544_vm13 = vcmp.ge.f32.partialorder %v4770_v10, %v2743_v13 }
 0x766   :  { %v2754_v46 = vsel %vm2544_vm13, 1.0, %v5185_v61 }
 0x769   :  { %2473 = vrot.lane.b32.xlu0 %v4727_v28, %s3347_s3  ;;  %2449 = vrot.lane.b32.xlu1 %v4727_v28, %s3342_s13 }
 0x76d   :  { %2457 = vrot.lane.b32.xlu0 %v4727_v28, %s3343_s14  ;;  %2453 = vrot.lane.b32.xlu1 %v4727_v28, %s3341_s12  ;;  %v2527_v28 = vsub.f32 %v2743_v13, %v2443_v0 }
 0x7d3   :  { %v2466_v20 = vpop.permute.xlu0 %2465  ;;  %v2462_v38 = vpop.permute.xlu1 %2461 }
 0x7d4   :  { %v2468_v33 = vmul.f32 %v4714_v11, %v2466_v20  ;;  %v2464_v29 = vmul.f32 %v4714_v11, %v2462_v38 }
 0x7d6   :  { %2498 = vrot.lane.b32.xlu0 %v2468_v33, %s3338_s9  ;;  %2488 = vrot.lane.b32.xlu1 %v2464_v29, %s3337_s8 }
 0x7d7   :  { %v2470_v53 = vpop.permute.xlu0 %2469  ;;  %v2446_v16 = vpop.permute.xlu1 %2445 }
 0x7d8   :  { %v2472_v15 = vmul.f32 %v4714_v11, %v2470_v53  ;;  %v2448_v48 = vmul.f32 %v4714_v11, %v2446_v16 }
 0x7da   :  { %2508 = vrot.lane.b32.xlu0 %v2472_v15, %s3336_s4  ;;  %2483 = vrot.lane.b32.xlu1 %v2448_v48, %s3337_s8 }
 0x7db   :  { %v2474_v32 = vpop.permute.xlu0 %2473  ;;  %v2450_v43 = vpop.permute.xlu1 %2449 }
 0x7dc   :  { %v2476_v14 = vmul.f32 %v4714_v11, %v2474_v32  ;;  %v2452_v26 = vmul.f32 %v4714_v11, %v2450_v43 }
 0x7de   :  { %2518 = vrot.lane.b32.xlu0 %v2476_v14, %s3339_s10  ;;  %2493 = vrot.lane.b32.xlu1 %v2452_v26, %s3338_s9 }
 0x7df   :  { %v2454_v30 = vpop.permute.xlu1 %2453  ;;  %v2458_v50 = vpop.permute.xlu0 %2457 }
 0x7e0   :  { %v2456_v44 = vmul.f32 %v4714_v11, %v2454_v30  ;;  %v2460_v40 = vmul.f32 %v4714_v11, %v2458_v50 }
 0x7e2   :  { %2503 = vrot.lane.b32.xlu1 %v2456_v44, %s3336_s4  ;;  %2646 = vrot.lane.b32.xlu0 %v2481_v37, %s3348_s23  ;;  %v2748_v45 = vadd.f32 -1.0, %v2460_v40 }
 0x7e4   :  { %v2533_v51 = vsub.f32 %v2748_v45, %v2460_v40 }
 0x7e6   :  { %2621 = vrot.lane.b32.xlu1 %v2460_v40, %s3340_s11  ;;  %2513 = vrot.lane.b32.xlu0 %v2460_v40, %s3339_s10 }
 0x7ea   :  { %2630 = vrot.lane.b32.xlu1 %v2468_v33, %s3349_s18  ;;  %2625 = vrot.lane.b32.xlu0 %v2464_v29, %s3350_s19 }
 0x7ee   :  { %2635 = vrot.lane.b32.xlu1 %v2472_v15, %s3351_s20  ;;  %2653 = vrot.lane.b32.xlu0 %v2481_v37, %s3352_s21 }
 0x7f2   :  { %2640 = vrot.lane.b32.xlu1 %v2476_v14, %s3353_s22  ;;  %2660 = vrot.lane.b32.xlu0 %v2481_v37, %s3354_s24 }
 0x7f6   :  { %2667 = vrot.lane.b32.xlu1 %v2481_v37, %s3355_s25  ;;  %2593 = vrot.lane.b32.xlu0 %v2533_v51, %s3340_s11 }
 0x848   :  { %v2499_v39 = vpop.permute.xlu0 %2498  ;;  %v2489_v41 = vpop.permute.xlu1 %2488 }
 0x849   :  { %v2491_v54 = vadd.f32 %v2489_v41, %v2460_v40 }
 0x84b   :  { %v2749_v55 = vadd.f32 -1.0, %v2491_v54  ;;  %v2501_v58 = vadd.f32 %v2499_v39, %v2491_v54 }
 0x84c   :  { %v2509_v2 = vpop.permute.xlu0 %2508  ;;  %v2484_v22 = vpop.permute.xlu1 %2483 }
 0x84d   :  { %v2535_v35 = vsub.f32 %v2749_v55, %v2489_v41  ;;  %v2511_v52 = vadd.f32 %v2509_v2, %v2501_v58  ;;  %v2750_v6 = vadd.f32 -1.0, %v2501_v58  ;;  %v2486_v42 = vadd.f32 %v2484_v22, %v2443_v0 }
 0x84f   :  { %v2751_v27 = vadd.f32 -1.0, %v2511_v52  ;;  %v2744_v60 = vadd.f32 -1.0, %v2486_v42  ;;  %2598 = vrot.lane.b32.xlu1 %v2535_v35, %s3340_s11  ;;  %v2537_v18 = vsub.f32 %v2750_v6, %v2499_v39 }
 0x850   :  { %v2519_v47 = vpop.permute.xlu0 %2518  ;;  %v2494_v4 = vpop.permute.xlu1 %2493 }
 0x851   :  { %v2539_v21 = vsub.f32 %v2751_v27, %v2509_v2  ;;  %vm2547_vm12 = vcmp.ge.f32.partialorder %v4770_v10, %v2744_v60  ;;  %v2521_v57 = vadd.f32 %v2519_v47, %v2511_v52  ;;  %2604 = vrot.lane.b32.xlu0 %v2537_v18, %s3340_s11  ;;  %v2496_v19 = vadd.f32 %v2494_v4, %v2486_v42 }
 0x852   :  { %v2755_v7 = vsel %vm2547_vm12, 1.0, %v5185_v61  ;;  %v2528_v20 = vsub.f32 %v2744_v60, %v2484_v22 }
 0x853   :  { %v2752_v12 = vadd.f32 -1.0, %v2521_v57  ;;  %2610 = vrot.lane.b32.xlu1 %v2539_v21, %s3340_s11  ;;  %v2745_v5 = vadd.f32 -1.0, %v2496_v19  ;;  %v2550_v8 = vadd.f32 %v2755_v7, %v2754_v46 }
 0x854   :  { %v2504_v34 = vpop.permute.xlu1 %2503  ;;  %v2647_v11 = vpop.permute.xlu0 %2646 }
 0x855   :  { %v2541_v56 = vsub.f32 %v2752_v12, %v2519_v47  ;;  %v2506_v36 = vadd.f32 %v2504_v34, %v2496_v19  ;;  %vm2551_vm14 = vcmp.ge.f32.partialorder %v4770_v10, %v2745_v5  ;;  %v2529_v26 = vsub.f32 %v2745_v5, %v2494_v4 }
 0x856   :  { %v2756_v59 = vsel %vm2551_vm14, 1.0, %v5185_v61 }
 0x857   :  { %v2746_v63 = vadd.f32 -1.0, %v2506_v36  ;;  %2616 = vrot.lane.b32.xlu0 %v2541_v56, %s3340_s11  ;;  %v2554_v49 = vadd.f32 %v2756_v59, %v2550_v8 }
 0x858   :  { %v2622_v23 = vpop.permute.xlu1 %2621  ;;  %v2514_v17 = vpop.permute.xlu0 %2513 }
 0x859   :  { %vm2555_vm15 = vcmp.ge.f32.partialorder %v4770_v10, %v2746_v63  ;;  %v2516_v48 = vadd.f32 %v2514_v17, %v2506_v36  ;;  %v2530_v54 = vsub.f32 %v2746_v63, %v2504_v34 }
 0x85a   :  { %v2757_v1 = vsel %vm2555_vm15, 1.0, %v5185_v61 }
 0x85b   :  { %v2558_v3 = vadd.f32 %v2757_v1, %v2554_v49  ;;  %v2747_v50 = vadd.f32 -1.0, %v2516_v48 }
 0x85c   :  { %v2631_v31 = vpop.permute.xlu1 %2630  ;;  %v2626_v29 = vpop.permute.xlu0 %2625 }
 0x85d   :  { %vm2559_vm0 = vcmp.eq.f32.partialorder %v2558_v3, 0.0  ;;  %vm2562_vm2 = vcmp.eq.f32.partialorder %v2558_v3, 1.0  ;;  %vm2565_vm3 = vcmp.eq.f32.partialorder %v2558_v3, 2.0  ;;  %vm2568_vm4 = vcmp.eq.f32.partialorder %v2558_v3, 3.0 }
 0x85e   :  { %v4785_v38 = vsel %vm2559_vm0, 1.0, %v5185_v61  ;;  %v4788_v33 = vsel %vm2562_vm2, 1.0, %v5185_v61  ;;  %v4791_v53 = vsel %vm2565_vm3, 1.0, %v5185_v61  ;;  %v4798_v14 = vsel %vm2568_vm4, 1.0, %v5185_v61 }
 0x85f   :  { %v2574_v16 = vmul.f32 %v4785_v38, %v2527_v28  ;;  %v2575_v15 = vmul.f32 %v4788_v33, %v2528_v20  ;;  %v2583_v24 = vmul.f32 %v4785_v38, %v2443_v0  ;;  %v2584_v32 = vmul.f32 %v4788_v33, %v2484_v22 }
 0x860   :  { %v2636_v43 = vpop.permute.xlu1 %2635  ;;  %vm2571_vm5 = vcmp.eq.f32.partialorder %v2558_v3, 4.0  ;;  %v2586_v30 = vmul.f32 %v4791_v53, %v2494_v4  ;;  %v2624_v37 = vmul.f32 %v4785_v38, %v2622_v23  ;;  %v2577_v40 = vmul.f32 %v4791_v53, %v2529_v26  ;;  %v2654_v41 = vpop.permute.xlu0 %2653 }
 0x861   :  { %v2576_v9 = vadd.f32 %v2575_v15, %v2574_v16  ;;  %v2585_v25 = vadd.f32 %v2584_v32, %v2583_v24  ;;  %v4802_v44 = vsel %vm2571_vm5, 1.0, %v5185_v61  ;;  %v2588_v51 = vmul.f32 %v4798_v14, %v2504_v34 }
 0x862   :  { %v2628_v39 = vmul.f32 %v4788_v33, %v2626_v29  ;;  %v2649_v0 = vmul.f32 %v4788_v33, %v2647_v11  ;;  %v2590_v2 = vmul.f32 %v4802_v44, %v2514_v17  ;;  %v2651_v22 = vmul.f32 %v4785_v38, %v2647_v11 }
 0x863   :  { %v2587_v45 = vadd.f32 %v2586_v30, %v2585_v25  ;;  %v2578_v55 = vadd.f32 %v2577_v40, %v2576_v9  ;;  %v2579_v52 = vmul.f32 %v4798_v14, %v2530_v54  ;;  %v2531_v6 = vsub.f32 %v2747_v50, %v2514_v17 }
 0x864   :  { %v2641_v61 = vpop.permute.xlu1 %2640  ;;  %v2629_v35 = vadd.f32 %v2628_v39, %v2624_v37  ;;  %v2633_v27 = vmul.f32 %v4791_v53, %v2631_v31  ;;  %v2650_v60 = vadd.f32 %v4785_v38, %v2649_v0  ;;  %v2656_v18 = vmul.f32 %v4791_v53, %v2654_v41  ;;  %v2661_v47 = vpop.permute.xlu0 %2660 }
 0x865   :  { %v2589_v58 = vadd.f32 %v2588_v51, %v2587_v45  ;;  %v2580_v13 = vadd.f32 %v2579_v52, %v2578_v55  ;;  %v2652_v4 = vadd.f32 %v4802_v44, %v2651_v22  ;;  %v2658_v57 = vmul.f32 %v4788_v33, %v2654_v41 }
 0x866   :  { %v2634_v21 = vadd.f32 %v2633_v27, %v2629_v35  ;;  %v2581_v19 = vmul.f32 %v4802_v44, %v2531_v6  ;;  %v2638_v7 = vmul.f32 %v4798_v14, %v2636_v43  ;;  %v2663_v5 = vmul.f32 %v4798_v14, %v2661_v47 }
 0x867   :  { %v2591_v42 = vadd.f32 %v2590_v2, %v2589_v58  ;;  %v2665_v34 = vmul.f32 %v4791_v53, %v2661_v47  ;;  %v2657_v56 = vadd.f32 %v2656_v18, %v2650_v60  ;;  %v2643_v36 = vmul.f32 %v4802_v44, %v2641_v61 }
 0x868   :  { %v2668_v12 = vpop.permute.xlu1 %2667  ;;  %v2582_v11 = vadd.f32 %v2581_v19, %v2580_v13  ;;  %v2639_v46 = vadd.f32 %v2638_v7, %v2634_v21  ;;  %v2659_v8 = vadd.f32 %v2658_v57, %v2652_v4 }
 0x869   :  { %3277 = vrcp.f32 %v2591_v42  ;;  %v2670_v59 = vmul.f32 %v4802_v44, %v2668_v12  ;;  %v2672_v63 = vmul.f32 %v4798_v14, %v2668_v12  ;;  %v2664_v23 = vadd.f32 %v2663_v5, %v2657_v56 }
 0x86a   :  { %v2666_v17 = vadd.f32 %v2665_v34, %v2659_v8  ;;  %v2677_v49 = vsub.f32 %v4770_v10, %v2582_v11  ;;  %v2644_v1 = vadd.f32 %v2643_v36, %v2639_v46 }
 0x86b   :  { %v2671_v3 = vadd.f32 %v2670_v59, %v2664_v23 }
 0x86c   :  { %v2673_v28 = vadd.f32 %v2672_v63, %v2666_v17 }
 0x86e   :  { %v2686_v48 = vadd.f32 %v2673_v28, %v2671_v3 }
 0x873   :  { %v3278_v31 = vpop.eup %3277 }
 0x874   :  { %v2678_v20 = vmul.f32 %v3278_v31, %v2677_v49  ;;  %v2676_v29 = vmul.f32 %v3278_v31, %v2644_v1 }
 0x876   :  { %v2681_v16 = vmul.f32 %v2678_v20, %v2676_v29  ;;  %v2679_v15 = vsub.f32 1.0, %v2678_v20  ;;  %v2687_v24 = vmul.f32 2.0, %v2676_v29  ;;  %v2696_v9 = vmul.f32 %v2678_v20, %v2673_v28 }
 0x877   :  { %v2695_v55 = vmul.f32 %v2676_v29, %v2676_v29 }
 0x878   :  { %v2680_v32 = vmul.f32 %v2679_v15, %v2678_v20  ;;  %v2682_v43 = vmul.f32 %v2681_v16, %v2678_v20  ;;  %v2688_v26 = vsub.f32 %v2686_v48, %v2687_v24  ;;  %v2697_v10 = vmul.f32 %v2696_v9, %v2678_v20 }
 0x879   :  { %v2700_v45 = vmul.f32 %v2679_v15, %v2671_v3 }
 0x87a   :  { %v2683_v25 = vmul.f32 %v2680_v32, %v2671_v3  ;;  %v2689_v30 = vmul.f32 %v2688_v26, %v2680_v32  ;;  %v2698_v37 = vmul.f32 %v2687_v24, %v2680_v32 }
 0x87b   :  { %v2701_v41 = vmul.f32 %v2700_v45, %v2679_v15 }
 0x87c   :  { %v2684_v50 = vadd.f32 %v2683_v25, %v2682_v43  ;;  %v2690_v40 = vadd.f32 %v2689_v30, %v2676_v29  ;;  %v2699_v39 = vadd.f32 %v2698_v37, %v2697_v10 }
 0x87e   :  { %3279 = vrcp.f32 %v2690_v40  ;;  %v2685_v51 = vmul.f32 %v2684_v50, %v2644_v1  ;;  %v2702_v54 = vadd.f32 %v2701_v41, %v2699_v39 }
 0x880   :  { %v2703_v58 = vmul.f32 %v2702_v54, %v2695_v55 }
 0x888   :  { %v3280_v0 = vpop.eup %3279 }
 0x889   :  { %v2693_v2 = vmul.f32 %v3280_v0, %v2685_v51  ;;  %v2704_v61 = vmul.f32 %v3280_v0, %v2703_v58 }
 0x88b   :  { %v2705_v22 = vmul.f32 %v3280_v0, %v2704_v61 }
 0x88d   :  { %3281 = vlog2.f32 %v2705_v22 }
 0x897   :  { %v3282_v35 = vpop.eup %3281 }
 0x898   :  { %v2707_v6 = vmul.f32 0.6931472, %v3282_v35 }
 0x89a   :  { %v2713_v42 = vsel %vm4827_vm8, %v2707_v6, 0.0 }
 0x89b   :  { %2714 = vst.msk [vmem:[#allocation4] sm:$0xff] %vm30_vm1, %v2713_v42 }
 0x89c   :  { %3295 = shalt.err (!%p3292_p4)
}
 0x89d   :  { %s3296_s2 = scalar_lea.hbm %s4873_s6, 128 }
 0x89e   :  { %p3297_p5 = scmp.ne.s32.totalorder %s4873_s6, %s3296_s2  ;;  %p3300_p6 = scmp.lt.u32.totalorder %s3296_s2, %s4873_s6 }
 0x8a0   :  { %p3302_p7 = pnand %p3300_p6, %p3297_p5 }
 0x8a2   :  { %3305 = shalt.err (!%p3302_p7)
}
 0x8a3   :  { %2734 = dma.vmem_to_hbm [thread:$0]  %s2732_s28, 128, %s4873_s6, [#allocation5]   ;;  %v2594_v27 = vpop.permute.xlu0 %2593 }
 0x8a4   :  { %v2596_v60 = vmul.f32 %v4785_v38, %v2594_v27  ;;  %s3357_s6 = smov [#allocation2]  }
 0x8a5   :  { %s2721_s12 = sshll.u32 %s3357_s6, 4  ;;  %s2722_s12 = int_to_ptr.vmem [resolvable:$true] %s2721_s12 }
 0x8a6   :  { %s3306_s13 = scalar_lea.vmem %s2722_s12, 128  ;;  %p3311_p9 = scmp.lt.s32.totalorder %s2722_s12, %s2722_s12 }
 0x8a7   :  { %p3307_p8 = scmp.ne.s32.totalorder %s2722_s12, %s3306_s13  ;;  %p3312_p10 = scmp.lt.s32.totalorder %s3306_s13, %s3306_s13 }
 0x8a9   :  { %p3313_p11 = por %p3312_p10, %p3311_p9 }
 0x8ab   :  { %p3314_p12 = pnand %p3313_p11, %p3307_p8 }
 0x8c1   :  { %v2599_v13 = vpop.permute.xlu1 %2598 }
 0x8c2   :  { %v2601_v18 = vmul.f32 %v4788_v33, %v2599_v13 }
 0x8c3   :  { %v2605_v47 = vpop.permute.xlu0 %2604 }
 0x8c4   :  { %v2602_v4 = vadd.f32 %v2601_v18, %v2596_v60  ;;  %v2607_v21 = vmul.f32 %v4791_v53, %v2605_v47 }
 0x8c5   :  { %v2611_v57 = vpop.permute.xlu1 %2610 }
 0x8c6   :  { %v2608_v19 = vadd.f32 %v2607_v21, %v2602_v4  ;;  %v2613_v12 = vmul.f32 %v4798_v14, %v2611_v57 }
 0x8c8   :  { %v2614_v5 = vadd.f32 %v2613_v12, %v2608_v19 }
 0x8c9   :  { %v2617_v7 = vpop.permute.xlu0 %2616 }
 0x8ca   :  { %v2619_v34 = vmul.f32 %v4802_v44, %v2617_v7 }
 0x8cc   :  { %v2620_v11 = vadd.f32 %v2619_v34, %v2614_v5 }
 0x8ce   :  { %v2694_v56 = vadd.f32 %v2693_v2, %v2620_v11 }
 0x8d0   :  { %v2711_v38 = vsel %vm4827_vm8, %v2694_v56, %v4767_v62 }
 0x8d1   :  { %2712 = vst.msk [vmem:[#allocation2] sm:$0xff] %vm30_vm1, %v2711_v38 }
 0x8d2   :  { %3317 = shalt.err (!%p3314_p12)
}
 0x8d3   :  { %s3318_s16 = scalar_lea.hbm %s4872_s5, 128 }
 0x8d4   :  { %p3319_p13 = scmp.ne.s32.totalorder %s4872_s5, %s3318_s16  ;;  %p3322_p0 = scmp.lt.u32.totalorder %s3318_s16, %s4872_s5 }
 0x8d6   :  { %p3324_p1 = pnand %p3322_p0, %p3319_p13 }
 0x8d8   :  { %3327 = shalt.err (!%p3324_p1)
}
 0x8d9   :  { %2724 = dma.vmem_to_hbm [thread:$0]  %s2722_s12, 128, %s4872_s5, [#allocation3]  }
 0x8da   :  { %3328 = dma.done.wait [#allocation3], 128  }
 0x8db   :  { %3329 = vsyncadd [#allocation3], 4294967168 }
 0x8dc   :  { %3330 = dma.done.wait [#allocation5], 128  }
 0x8dd   :  { %3331 = vsyncadd [#allocation5], 4294967168 }
 0x8de   :  { %2741 = vsyncpa [#allocation3], 1 }
 0x8df   :  { %2742 = vsyncpa [#allocation5], 1 }

</bundles_post_ra>
